<compile_context>
chip_gen: v7x
topology: tpu7x:2x2x1
jax: 0.10.0
libtpu: 0.0.40
codegen_flags: <defaults>
</compile_context>

<pallas_src>
import functools

import jax
import jax.numpy as jnp
from jax import lax
from jax.experimental import pallas as pl
from jax.experimental.pallas import tpu as pltpu


def _clstm_kernel(x_ref, h_ref, c_ref, w_ref, b_ref,
                  h_out_ref, c_out_ref,
                  xflat_ref, slab_ref,
                  *, H, W, F, Cx, k, p, Cin_p, OFF, Hb):
    # x_ref:  (1, Cx, H*W)          bf16   input image, channels-major
    # h_ref:  (1, F,  H*W)          bf16   previous hidden state
    # c_ref:  (1, F,  H*W)          f32    previous cell state
    # w_ref:  (4F, k*k*Cin_p)       bf16   conv weight, tap-major columns
    # b_ref:  (4F, 1)               f32    conv bias
    # xflat_ref: (Cin_p, Lflat)     bf16   scratch: flattened zero-haloed combined input
    # slab_ref:  (k*k*Cin_p, Hb*W)  bf16   scratch: im2col slab (one row band)
    HW = H * W
    Cin = Cx + F
    n_bands = -(-H // Hb)

    # ---- 1) fused concat + SAME-pad: flattened combined input with zero halo ----
    # xflat[c, OFF + h*W + w] = combined[c, h, w]; halo + pad channels stay 0.
    # Channel order is [hidden (F), x (Cx), zero-pad] (weight reordered to match)
    # so both data stores start on bf16 sublane tiles.
    xflat_ref[...] = jnp.zeros(xflat_ref.shape, xflat_ref.dtype)
    xflat_ref[0:F, OFF:OFF + HW] = h_ref[0]
    xflat_ref[F:Cin, OFF:OFF + HW] = x_ref[0]

    w_mat = w_ref[...]          # (4F, K) bf16 -- loaded once, reused across bands
    b_col = b_ref[...]          # (4F, 1) f32

    base = OFF - p * (W + 1)

    # ---- row-band loop (static, Python-unrolled; single band at small H*W) ----
    for bi in range(n_bands):
        h0 = bi * Hb
        rows = min(Hb, H - h0)
        L = rows * W
        band_off = h0 * W

        # Width wrap-around masks (a consequence of flattening H,W), per dx.
        col = lax.broadcasted_iota(jnp.int32, (1, L), 1) % W
        masks = {}
        for dx in range(k):
            dxo = dx - p
            if dxo != 0:
                masks[dx] = (col + dxo >= 0) & (col + dxo < W)

        # ---- 2) build the im2col slab from contiguous lane-shifted slices ----
        for dy in range(k):
            for dx in range(k):
                t = dy * k + dx
                s = base + band_off + dy * W + dx
                patch = xflat_ref[:, s:s + L]      # (Cin_p, L) contiguous slice
                if dx != p:
                    patch = jnp.where(masks[dx], patch, jnp.zeros((), patch.dtype))
                slab_ref[t * Cin_p:(t + 1) * Cin_p, 0:L] = patch

        # ---- 3) single MXU matmul: (4F, K) x (K, L) -> (4F, L), f32 accumulate ----
        slab = slab_ref[...] if L == slab_ref.shape[1] else slab_ref[:, 0:L]
        acc = jnp.dot(w_mat, slab, preferred_element_type=jnp.float32)
        acc = acc + b_col                           # (4F,1) broadcast over lanes

        # ---- 4) LSTM gate math, all (F, L): lane-dense ----
        i = jax.nn.sigmoid(acc[0 * F:1 * F])
        f = jax.nn.sigmoid(acc[1 * F:2 * F])
        o = jax.nn.sigmoid(acc[2 * F:3 * F])
        g = jnp.tanh(acc[3 * F:4 * F])

        if n_bands == 1:
            c_prev = c_ref[0]
        else:
            c_prev = c_ref[0, :, band_off:band_off + L]
        next_c = f * c_prev.astype(jnp.float32) + i * g
        next_h = o * jnp.tanh(next_c)

        if n_bands == 1:
            c_out_ref[0] = next_c.astype(c_out_ref.dtype)
            h_out_ref[0] = next_h.astype(h_out_ref.dtype)
        else:
            c_out_ref[0, :, band_off:band_off + L] = next_c.astype(c_out_ref.dtype)
            h_out_ref[0, :, band_off:band_off + L] = next_h.astype(h_out_ref.dtype)


def clstm_cell_forward(x, hidden, cell, weight, bias, filter_size):
    """ConvLSTM cell forward (PyTorch CLSTM_cell semantics).

    Args (NCHW / PyTorch conventions, float32):
      x:      (B, input_chans, H, W)
      hidden: (B, num_features, H, W)
      cell:   (B, num_features, H, W)
      weight: (4*num_features, input_chans+num_features, k, k)  (Conv2d weight)
      bias:   (4*num_features,)
    Returns:
      (next_h, next_c) each (B, num_features, H, W), float32.
    """
    B, Cx, H, W = x.shape
    F = hidden.shape[1]
    k = filter_size
    assert k % 2 == 1, "CLSTM_cell SAME-padding semantics require an odd filter_size"
    p = (k - 1) // 2
    Cin = Cx + F
    HW = H * W

    # Pad channel count to a bf16-sublane-tile multiple so slab writes are aligned.
    Cin_p = -(-Cin // 16) * 16
    K = k * k * Cin_p
    # Data offset inside the flattened scratch: >= p*(W+1) halo, rounded up to a
    # lane-tile boundary so the in-kernel data store is lane-aligned.
    OFF = -(-(p * (W + 1)) // 128) * 128
    Lflat = OFF + HW + p * W + p

    # Spatial row-band size: keep the im2col slab under a fixed VMEM budget.
    SLAB_BUDGET_BYTES = 4 * 1024 * 1024
    Hb = max(1, min(H, SLAB_BUDGET_BYTES // (K * W * 2)))

    # ---- glue: reshapes only (NCHW is already channels-major), bf16 matmul operands ----
    x_r = x.reshape(B, Cx, HW).astype(jnp.bfloat16)
    h_r = hidden.reshape(B, F, HW).astype(jnp.bfloat16)
    c_r = cell.reshape(B, F, HW)

    # Weight: reorder input channels to [hidden, x] (matches xflat), pad Cin -> Cin_p,
    # and flatten tap-major: column index = (dy*k + dx)*Cin_p + c.
    w_perm = jnp.concatenate([weight[:, Cx:], weight[:, :Cx]], axis=1)   # (4F, Cin, k, k)
    w_perm = jnp.transpose(w_perm, (0, 2, 3, 1))                         # (4F, k, k, Cin)
    w_perm = jnp.pad(w_perm, ((0, 0), (0, 0), (0, 0), (0, Cin_p - Cin)))
    w_mat = w_perm.reshape(4 * F, K).astype(jnp.bfloat16)
    b_col = bias.reshape(4 * F, 1).astype(jnp.float32)

    kernel = functools.partial(_clstm_kernel, H=H, W=W, F=F, Cx=Cx, k=k, p=p,
                               Cin_p=Cin_p, OFF=OFF, Hb=Hb)

    out_shapes = (
        jax.ShapeDtypeStruct((B, F, HW), jnp.float32),  # next_h
        jax.ShapeDtypeStruct((B, F, HW), jnp.float32),  # next_c
    )

    next_h, next_c = pl.pallas_call(
        kernel,
        out_shape=out_shapes,
        grid_spec=pltpu.PrefetchScalarGridSpec(
            num_scalar_prefetch=0,
            grid=(B,),
            in_specs=[
                pl.BlockSpec((1, Cx, HW), lambda b: (b, 0, 0)),
                pl.BlockSpec((1, F, HW), lambda b: (b, 0, 0)),
                pl.BlockSpec((1, F, HW), lambda b: (b, 0, 0)),
                pl.BlockSpec((4 * F, K), lambda b: (0, 0)),
                pl.BlockSpec((4 * F, 1), lambda b: (0, 0)),
            ],
            out_specs=[
                pl.BlockSpec((1, F, HW), lambda b: (b, 0, 0)),
                pl.BlockSpec((1, F, HW), lambda b: (b, 0, 0)),
            ],
            scratch_shapes=[
                pltpu.VMEM((Cin_p, Lflat), jnp.bfloat16),  # xflat
                pltpu.VMEM((K, Hb * W), jnp.bfloat16),     # im2col slab (one band)
            ],
        ),
        compiler_params=pltpu.CompilerParams(
            dimension_semantics=("parallel",)),
    )(x_r, h_r, c_r, w_mat, b_col)

    # Free reshapes back to NCHW.
    return next_h.reshape(B, F, H, W), next_c.reshape(B, F, H, W)


def _reference_forward(x, hidden, cell, weight, bias, filter_size):
    """Pure-JAX f32 reference matching the PyTorch module (NCHW conv)."""
    p = (filter_size - 1) // 2
    combined = jnp.concatenate([x, hidden], axis=1)
    A = lax.conv_general_dilated(
        combined, weight, window_strides=(1, 1),
        padding=((p, p), (p, p)),
        dimension_numbers=("NCHW", "OIHW", "NCHW"),
    ) + bias.reshape(1, -1, 1, 1)
    ai, af, ao, ag = jnp.split(A, 4, axis=1)
    i = jax.nn.sigmoid(ai)
    f = jax.nn.sigmoid(af)
    o = jax.nn.sigmoid(ao)
    g = jnp.tanh(ag)
    next_c = f * cell + i * g
    next_h = o * jnp.tanh(next_c)
    return next_h, next_c


if __name__ == "__main__":
    # Small shapes consistent with the module: batch=2, input_chans=4,
    # num_features=32 (hidden channels), spatial 16x16, filter_size=3.
    B, Cx, Fh, H, W, ksz = 2, 4, 32, 16, 16, 3

    key = jax.random.PRNGKey(0)
    kx, kh, kc, kw, kb = jax.random.split(key, 5)

    x = jax.random.normal(kx, (B, Cx, H, W), jnp.float32)
    hidden = jax.random.normal(kh, (B, Fh, H, W), jnp.float32)
    cell = jax.random.normal(kc, (B, Fh, H, W), jnp.float32)

    # Deterministic Conv2d-shaped parameters: (4F, Cx+F, k, k), (4F,)
    fan_in = (Cx + Fh) * ksz * ksz
    bound = 1.0 / (fan_in ** 0.5)
    weight = jax.random.uniform(kw, (4 * Fh, Cx + Fh, ksz, ksz), jnp.float32,
                                -bound, bound)
    bias = jax.random.uniform(kb, (4 * Fh,), jnp.float32, -bound, bound)

    next_h, next_c = clstm_cell_forward(x, hidden, cell, weight, bias, ksz)
    next_h = jax.block_until_ready(next_h)
    next_c = jax.block_until_ready(next_c)

    ref_h, ref_c = _reference_forward(x, hidden, cell, weight, bias, ksz)
    # bf16 matmul operands with f32 accumulation -> loosened tolerance vs f32 ref.
    assert jnp.allclose(next_h, ref_h, atol=1e-2, rtol=1e-2)
    assert jnp.allclose(next_c, ref_c, atol=1e-2, rtol=1e-2)

    print("KERNEL_OK")
</pallas_src>

<mosaic_0001>
module attributes {stable_mosaic.version = 11 : i64} {
  func.func @_clstm_kernel(%arg0: i32, %arg1: memref<1x4x256xbf16, #tpu.memory_space<vmem>>, %arg2: memref<1x32x256xbf16, #tpu.memory_space<vmem>>, %arg3: memref<1x32x256xf32, #tpu.memory_space<vmem>>, %arg4: memref<128x432xbf16, #tpu.memory_space<vmem>>, %arg5: memref<128x1xf32, #tpu.memory_space<vmem>>, %arg6: memref<1x32x256xf32, #tpu.memory_space<vmem>>, %arg7: memref<1x32x256xf32, #tpu.memory_space<vmem>>, %arg8: memref<48x401xbf16, #tpu.memory_space<vmem>>, %arg9: memref<432x256xbf16, #tpu.memory_space<vmem>>) attributes {dimension_semantics = [#tpu.dimension_semantics<parallel>], iteration_bounds = array<i64: 2>, scalar_prefetch = 0 : i64, scratch_operands = 2 : i64, tpu.core_type = #tpu.core_type<tc>, window_params = [{transform_indices = @transform_0, window_bounds = array<i64: 1, 4, 256>}, {transform_indices = @transform_1, window_bounds = array<i64: 1, 32, 256>}, {transform_indices = @transform_2, window_bounds = array<i64: 1, 32, 256>}, {pipeline_mode = #tpu.pipeline_mode<synchronous>, transform_indices = @transform_3, window_bounds = array<i64: 128, 432>}, {pipeline_mode = #tpu.pipeline_mode<synchronous>, transform_indices = @transform_4, window_bounds = array<i64: 128, 1>}, {transform_indices = @transform_5, window_bounds = array<i64: 1, 32, 256>}, {transform_indices = @transform_6, window_bounds = array<i64: 1, 32, 256>}]} {
    %cst = arith.constant 0.000000e+00 : bf16
    %0 = vector.broadcast %cst : bf16 to vector<48x401xbf16>
    %c0 = arith.constant 0 : index
    %c0_0 = arith.constant 0 : index
    %1 = vector.load %arg8[%c0, %c0_0] : memref<48x401xbf16, #tpu.memory_space<vmem>>, vector<48x401xbf16>
    tpu.vector_store %arg8[%c0, %c0_0], %0 {strides = array<i32>} : memref<48x401xbf16, #tpu.memory_space<vmem>>, vector<48x401xbf16>,
    %c0_1 = arith.constant 0 : index
    %c0_2 = arith.constant 0 : index
    %c0_3 = arith.constant 0 : index
    %2 = vector.load %arg2[%c0_1, %c0_2, %c0_3] : memref<1x32x256xbf16, #tpu.memory_space<vmem>>, vector<1x32x256xbf16>
    %3 = vector.shape_cast %2 : vector<1x32x256xbf16> to vector<32x256xbf16>
    %c0_4 = arith.constant 0 : index
    %c128 = arith.constant 128 : index
    %4 = vector.load %arg8[%c0_4, %c128] : memref<48x401xbf16, #tpu.memory_space<vmem>>, vector<32x256xbf16>
    tpu.vector_store %arg8[%c0_4, %c128], %3 {strides = array<i32>} : memref<48x401xbf16, #tpu.memory_space<vmem>>, vector<32x256xbf16>,
    %c0_5 = arith.constant 0 : index
    %c0_6 = arith.constant 0 : index
    %c0_7 = arith.constant 0 : index
    %5 = vector.load %arg1[%c0_5, %c0_6, %c0_7] : memref<1x4x256xbf16, #tpu.memory_space<vmem>>, vector<1x4x256xbf16>
    %6 = vector.shape_cast %5 : vector<1x4x256xbf16> to vector<4x256xbf16>
    %c32 = arith.constant 32 : index
    %c128_8 = arith.constant 128 : index
    %7 = vector.load %arg8[%c32, %c128_8] : memref<48x401xbf16, #tpu.memory_space<vmem>>, vector<4x256xbf16>
    tpu.vector_store %arg8[%c32, %c128_8], %6 {strides = array<i32>} : memref<48x401xbf16, #tpu.memory_space<vmem>>, vector<4x256xbf16>,
    %c0_9 = arith.constant 0 : index
    %c0_10 = arith.constant 0 : index
    %8 = vector.load %arg4[%c0_9, %c0_10] : memref<128x432xbf16, #tpu.memory_space<vmem>>, vector<128x432xbf16>
    %c0_11 = arith.constant 0 : index
    %c0_12 = arith.constant 0 : index
    %9 = vector.load %arg5[%c0_11, %c0_12] : memref<128x1xf32, #tpu.memory_space<vmem>>, vector<128x1xf32>
    %10 = tpu.iota {dimensions = array<i32: 1>} : vector<1x256xi32>
    %c16_i32 = arith.constant 16 : i32
    %c0_i32 = arith.constant 0 : i32
    %11 = arith.cmpi eq, %c16_i32, %c0_i32 : i32
    %c1_i32 = arith.constant 1 : i32
    %12 = arith.select %11, %c1_i32, %c16_i32 : i32
    %13 = vector.broadcast %12 : i32 to vector<1x256xi32>
    %14 = arith.remsi %10, %13 : vector<1x256xi32>
    %c0_i32_13 = arith.constant 0 : i32
    %15 = vector.broadcast %c0_i32_13 : i32 to vector<1x256xi32>
    %16 = arith.cmpi ne, %14, %15 : vector<1x256xi32>
    %c0_i32_14 = arith.constant 0 : i32
    %17 = vector.broadcast %c0_i32_14 : i32 to vector<1x256xi32>
    %18 = arith.cmpi slt, %14, %17 : vector<1x256xi32>
    %c0_i32_15 = arith.constant 0 : i32
    %19 = arith.cmpi slt, %12, %c0_i32_15 : i32
    %20 = vector.broadcast %19 : i1 to vector<1x256xi1>
    %21 = vector.broadcast %20 : vector<1x256xi1> to vector<1x256xi1>
    %22 = arith.xori %18, %21 : vector<1x256xi1>
    %23 = arith.andi %22, %16 : vector<1x256xi1>
    %24 = vector.broadcast %12 : i32 to vector<1x256xi32>
    %25 = arith.addi %14, %24 : vector<1x256xi32>
    %26 = arith.select %23, %25, %14 : vector<1x256xi1>, vector<1x256xi32>
    %c-1_i32 = arith.constant -1 : i32
    %27 = vector.broadcast %c-1_i32 : i32 to vector<1x256xi32>
    %28 = arith.addi %26, %27 : vector<1x256xi32>
    %c0_i32_16 = arith.constant 0 : i32
    %29 = vector.broadcast %c0_i32_16 : i32 to vector<1x256xi32>
    %30 = arith.cmpi sge, %28, %29 : vector<1x256xi32>
    %c-1_i32_17 = arith.constant -1 : i32
    %31 = vector.broadcast %c-1_i32_17 : i32 to vector<1x256xi32>
    %32 = arith.addi %26, %31 : vector<1x256xi32>
    %c16_i32_18 = arith.constant 16 : i32
    %33 = vector.broadcast %c16_i32_18 : i32 to vector<1x256xi32>
    %34 = arith.cmpi slt, %32, %33 : vector<1x256xi32>
    %35 = arith.andi %30, %34 : vector<1x256xi1>
    %c1_i32_19 = arith.constant 1 : i32
    %36 = vector.broadcast %c1_i32_19 : i32 to vector<1x256xi32>
    %37 = arith.addi %26, %36 : vector<1x256xi32>
    %c0_i32_20 = arith.constant 0 : i32
    %38 = vector.broadcast %c0_i32_20 : i32 to vector<1x256xi32>
    %39 = arith.cmpi sge, %37, %38 : vector<1x256xi32>
    %c1_i32_21 = arith.constant 1 : i32
    %40 = vector.broadcast %c1_i32_21 : i32 to vector<1x256xi32>
    %41 = arith.addi %26, %40 : vector<1x256xi32>
    %c16_i32_22 = arith.constant 16 : i32
    %42 = vector.broadcast %c16_i32_22 : i32 to vector<1x256xi32>
    %43 = arith.cmpi slt, %41, %42 : vector<1x256xi32>
    %44 = arith.andi %39, %43 : vector<1x256xi1>
    %c0_23 = arith.constant 0 : index
    %c111 = arith.constant 111 : index
    %45 = vector.load %arg8[%c0_23, %c111] : memref<48x401xbf16, #tpu.memory_space<vmem>>, vector<48x256xbf16>
    %cst_24 = arith.constant 0.000000e+00 : bf16
    %46 = vector.shape_cast %35 : vector<1x256xi1> to vector<1x256xi1>
    %47 = vector.broadcast %46 : vector<1x256xi1> to vector<48x256xi1>
    %48 = vector.broadcast %cst_24 : bf16 to vector<48x256xbf16>
    %49 = arith.select %47, %45, %48 : vector<48x256xi1>, vector<48x256xbf16>
    %c0_25 = arith.constant 0 : index
    %c0_26 = arith.constant 0 : index
    %50 = vector.load %arg9[%c0_25, %c0_26] : memref<432x256xbf16, #tpu.memory_space<vmem>>, vector<48x256xbf16>
    tpu.vector_store %arg9[%c0_25, %c0_26], %49 {strides = array<i32>} : memref<432x256xbf16, #tpu.memory_space<vmem>>, vector<48x256xbf16>,
    %c0_27 = arith.constant 0 : index
    %c112 = arith.constant 112 : index
    %51 = vector.load %arg8[%c0_27, %c112] : memref<48x401xbf16, #tpu.memory_space<vmem>>, vector<48x256xbf16>
    %c48 = arith.constant 48 : index
    %c0_28 = arith.constant 0 : index
    %52 = vector.load %arg9[%c48, %c0_28] : memref<432x256xbf16, #tpu.memory_space<vmem>>, vector<48x256xbf16>
    tpu.vector_store %arg9[%c48, %c0_28], %51 {strides = array<i32>} : memref<432x256xbf16, #tpu.memory_space<vmem>>, vector<48x256xbf16>,
    %c0_29 = arith.constant 0 : index
    %c113 = arith.constant 113 : index
    %53 = vector.load %arg8[%c0_29, %c113] : memref<48x401xbf16, #tpu.memory_space<vmem>>, vector<48x256xbf16>
    %cst_30 = arith.constant 0.000000e+00 : bf16
    %54 = vector.shape_cast %44 : vector<1x256xi1> to vector<1x256xi1>
    %55 = vector.broadcast %54 : vector<1x256xi1> to vector<48x256xi1>
    %56 = vector.broadcast %cst_30 : bf16 to vector<48x256xbf16>
    %57 = arith.select %55, %53, %56 : vector<48x256xi1>, vector<48x256xbf16>
    %c96 = arith.constant 96 : index
    %c0_31 = arith.constant 0 : index
    %58 = vector.load %arg9[%c96, %c0_31] : memref<432x256xbf16, #tpu.memory_space<vmem>>, vector<48x256xbf16>
    tpu.vector_store %arg9[%c96, %c0_31], %57 {strides = array<i32>} : memref<432x256xbf16, #tpu.memory_space<vmem>>, vector<48x256xbf16>,
    %c0_32 = arith.constant 0 : index
    %c127 = arith.constant 127 : index
    %59 = vector.load %arg8[%c0_32, %c127] : memref<48x401xbf16, #tpu.memory_space<vmem>>, vector<48x256xbf16>
    %cst_33 = arith.constant 0.000000e+00 : bf16
    %60 = vector.shape_cast %35 : vector<1x256xi1> to vector<1x256xi1>
    %61 = vector.broadcast %60 : vector<1x256xi1> to vector<48x256xi1>
    %62 = vector.broadcast %cst_33 : bf16 to vector<48x256xbf16>
    %63 = arith.select %61, %59, %62 : vector<48x256xi1>, vector<48x256xbf16>
    %c144 = arith.constant 144 : index
    %c0_34 = arith.constant 0 : index
    %64 = vector.load %arg9[%c144, %c0_34] : memref<432x256xbf16, #tpu.memory_space<vmem>>, vector<48x256xbf16>
    tpu.vector_store %arg9[%c144, %c0_34], %63 {strides = array<i32>} : memref<432x256xbf16, #tpu.memory_space<vmem>>, vector<48x256xbf16>,
    %c0_35 = arith.constant 0 : index
    %c128_36 = arith.constant 128 : index
    %65 = vector.load %arg8[%c0_35, %c128_36] : memref<48x401xbf16, #tpu.memory_space<vmem>>, vector<48x256xbf16>
    %c192 = arith.constant 192 : index
    %c0_37 = arith.constant 0 : index
    %66 = vector.load %arg9[%c192, %c0_37] : memref<432x256xbf16, #tpu.memory_space<vmem>>, vector<48x256xbf16>
    tpu.vector_store %arg9[%c192, %c0_37], %65 {strides = array<i32>} : memref<432x256xbf16, #tpu.memory_space<vmem>>, vector<48x256xbf16>,
    %c0_38 = arith.constant 0 : index
    %c129 = arith.constant 129 : index
    %67 = vector.load %arg8[%c0_38, %c129] : memref<48x401xbf16, #tpu.memory_space<vmem>>, vector<48x256xbf16>
    %cst_39 = arith.constant 0.000000e+00 : bf16
    %68 = vector.shape_cast %44 : vector<1x256xi1> to vector<1x256xi1>
    %69 = vector.broadcast %68 : vector<1x256xi1> to vector<48x256xi1>
    %70 = vector.broadcast %cst_39 : bf16 to vector<48x256xbf16>
    %71 = arith.select %69, %67, %70 : vector<48x256xi1>, vector<48x256xbf16>
    %c240 = arith.constant 240 : index
    %c0_40 = arith.constant 0 : index
    %72 = vector.load %arg9[%c240, %c0_40] : memref<432x256xbf16, #tpu.memory_space<vmem>>, vector<48x256xbf16>
    tpu.vector_store %arg9[%c240, %c0_40], %71 {strides = array<i32>} : memref<432x256xbf16, #tpu.memory_space<vmem>>, vector<48x256xbf16>,
    %c0_41 = arith.constant 0 : index
    %c143 = arith.constant 143 : index
    %73 = vector.load %arg8[%c0_41, %c143] : memref<48x401xbf16, #tpu.memory_space<vmem>>, vector<48x256xbf16>
    %cst_42 = arith.constant 0.000000e+00 : bf16
    %74 = vector.shape_cast %35 : vector<1x256xi1> to vector<1x256xi1>
    %75 = vector.broadcast %74 : vector<1x256xi1> to vector<48x256xi1>
    %76 = vector.broadcast %cst_42 : bf16 to vector<48x256xbf16>
    %77 = arith.select %75, %73, %76 : vector<48x256xi1>, vector<48x256xbf16>
    %c288 = arith.constant 288 : index
    %c0_43 = arith.constant 0 : index
    %78 = vector.load %arg9[%c288, %c0_43] : memref<432x256xbf16, #tpu.memory_space<vmem>>, vector<48x256xbf16>
    tpu.vector_store %arg9[%c288, %c0_43], %77 {strides = array<i32>} : memref<432x256xbf16, #tpu.memory_space<vmem>>, vector<48x256xbf16>,
    %c0_44 = arith.constant 0 : index
    %c144_45 = arith.constant 144 : index
    %79 = vector.load %arg8[%c0_44, %c144_45] : memref<48x401xbf16, #tpu.memory_space<vmem>>, vector<48x256xbf16>
    %c336 = arith.constant 336 : index
    %c0_46 = arith.constant 0 : index
    %80 = vector.load %arg9[%c336, %c0_46] : memref<432x256xbf16, #tpu.memory_space<vmem>>, vector<48x256xbf16>
    tpu.vector_store %arg9[%c336, %c0_46], %79 {strides = array<i32>} : memref<432x256xbf16, #tpu.memory_space<vmem>>, vector<48x256xbf16>,
    %c0_47 = arith.constant 0 : index
    %c145 = arith.constant 145 : index
    %81 = vector.load %arg8[%c0_47, %c145] : memref<48x401xbf16, #tpu.memory_space<vmem>>, vector<48x256xbf16>
    %cst_48 = arith.constant 0.000000e+00 : bf16
    %82 = vector.shape_cast %44 : vector<1x256xi1> to vector<1x256xi1>
    %83 = vector.broadcast %82 : vector<1x256xi1> to vector<48x256xi1>
    %84 = vector.broadcast %cst_48 : bf16 to vector<48x256xbf16>
    %85 = arith.select %83, %81, %84 : vector<48x256xi1>, vector<48x256xbf16>
    %c384 = arith.constant 384 : index
    %c0_49 = arith.constant 0 : index
    %86 = vector.load %arg9[%c384, %c0_49] : memref<432x256xbf16, #tpu.memory_space<vmem>>, vector<48x256xbf16>
    tpu.vector_store %arg9[%c384, %c0_49], %85 {strides = array<i32>} : memref<432x256xbf16, #tpu.memory_space<vmem>>, vector<48x256xbf16>,
    %c0_50 = arith.constant 0 : index
    %c0_51 = arith.constant 0 : index
    %87 = vector.load %arg9[%c0_50, %c0_51] : memref<432x256xbf16, #tpu.memory_space<vmem>>, vector<432x256xbf16>
    %cst_52 = arith.constant dense<0.000000e+00> : vector<128x256xf32>
    %88 = tpu.matmul %8, %87, %cst_52 {dimension_numbers = #tpu.dot_dimension_numbers<[1], [0], [0], [1], [0, 0, 1, 1], [], []>} : vector<128x432xbf16>, vector<432x256xbf16>, vector<128x256xf32> -> vector<128x256xf32>
    %89 = vector.broadcast %9 : vector<128x1xf32> to vector<128x256xf32>
    %90 = arith.addf %88, %89 : vector<128x256xf32>
    %91 = vector.extract_strided_slice %90 {offsets = [0, 0], sizes = [32, 256], strides = [1, 1]} : vector<128x256xf32> to vector<32x256xf32>
    %92 = arith.negf %91 : vector<32x256xf32>
    %93 = math.exp %92 : vector<32x256xf32>
    %cst_53 = arith.constant 1.000000e+00 : f32
    %94 = vector.broadcast %cst_53 : f32 to vector<32x256xf32>
    %95 = arith.addf %94, %93 : vector<32x256xf32>
    %96 = arith.divf %94, %95 : vector<32x256xf32>
    %97 = vector.extract_strided_slice %90 {offsets = [32, 0], sizes = [32, 256], strides = [1, 1]} : vector<128x256xf32> to vector<32x256xf32>
    %98 = arith.negf %97 : vector<32x256xf32>
    %99 = math.exp %98 : vector<32x256xf32>
    %cst_54 = arith.constant 1.000000e+00 : f32
    %100 = vector.broadcast %cst_54 : f32 to vector<32x256xf32>
    %101 = arith.addf %100, %99 : vector<32x256xf32>
    %102 = arith.divf %100, %101 : vector<32x256xf32>
    %103 = vector.extract_strided_slice %90 {offsets = [64, 0], sizes = [32, 256], strides = [1, 1]} : vector<128x256xf32> to vector<32x256xf32>
    %104 = arith.negf %103 : vector<32x256xf32>
    %105 = math.exp %104 : vector<32x256xf32>
    %cst_55 = arith.constant 1.000000e+00 : f32
    %106 = vector.broadcast %cst_55 : f32 to vector<32x256xf32>
    %107 = arith.addf %106, %105 : vector<32x256xf32>
    %108 = arith.divf %106, %107 : vector<32x256xf32>
    %109 = vector.extract_strided_slice %90 {offsets = [96, 0], sizes = [32, 256], strides = [1, 1]} : vector<128x256xf32> to vector<32x256xf32>
    %110 = math.tanh %109 : vector<32x256xf32>
    %c0_56 = arith.constant 0 : index
    %c0_57 = arith.constant 0 : index
    %c0_58 = arith.constant 0 : index
    %111 = vector.load %arg3[%c0_56, %c0_57, %c0_58] : memref<1x32x256xf32, #tpu.memory_space<vmem>>, vector<1x32x256xf32>
    %112 = vector.shape_cast %111 : vector<1x32x256xf32> to vector<32x256xf32>
    %113 = arith.mulf %102, %112 : vector<32x256xf32>
    %114 = arith.mulf %96, %110 : vector<32x256xf32>
    %115 = arith.addf %113, %114 : vector<32x256xf32>
    %116 = math.tanh %115 : vector<32x256xf32>
    %117 = arith.mulf %108, %116 : vector<32x256xf32>
    %c0_59 = arith.constant 0 : index
    %c0_60 = arith.constant 0 : index
    %c0_61 = arith.constant 0 : index
    %118 = vector.load %arg7[%c0_59, %c0_60, %c0_61] : memref<1x32x256xf32, #tpu.memory_space<vmem>>, vector<1x32x256xf32>
    %119 = vector.shape_cast %118 : vector<1x32x256xf32> to vector<32x256xf32>
    %120 = vector.shape_cast %115 : vector<32x256xf32> to vector<1x32x256xf32>
    tpu.vector_store %arg7[%c0_59, %c0_60, %c0_61], %120 {strides = array<i32>} : memref<1x32x256xf32, #tpu.memory_space<vmem>>, vector<1x32x256xf32>,
    %c0_62 = arith.constant 0 : index
    %c0_63 = arith.constant 0 : index
    %c0_64 = arith.constant 0 : index
    %121 = vector.load %arg6[%c0_62, %c0_63, %c0_64] : memref<1x32x256xf32, #tpu.memory_space<vmem>>, vector<1x32x256xf32>
    %122 = vector.shape_cast %121 : vector<1x32x256xf32> to vector<32x256xf32>
    %123 = vector.shape_cast %117 : vector<32x256xf32> to vector<1x32x256xf32>
    tpu.vector_store %arg6[%c0_62, %c0_63, %c0_64], %123 {strides = array<i32>} : memref<1x32x256xf32, #tpu.memory_space<vmem>>, vector<1x32x256xf32>,
    return
  }
  func.func @transform_0(%arg0: i32) -> (i32, i32, i32) {
    %c0_i32 = arith.constant 0 : i32
    %c0_i32_0 = arith.constant 0 : i32
    %c0_i32_1 = arith.constant 0 : i32
    return %arg0, %c0_i32, %c0_i32_0 : i32, i32, i32
  }
  func.func @transform_1(%arg0: i32) -> (i32, i32, i32) {
    %c0_i32 = arith.constant 0 : i32
    %c0_i32_0 = arith.constant 0 : i32
    %c0_i32_1 = arith.constant 0 : i32
    return %arg0, %c0_i32, %c0_i32_0 : i32, i32, i32
  }
  func.func @transform_2(%arg0: i32) -> (i32, i32, i32) {
    %c0_i32 = arith.constant 0 : i32
    %c0_i32_0 = arith.constant 0 : i32
    %c0_i32_1 = arith.constant 0 : i32
    return %arg0, %c0_i32, %c0_i32_0 : i32, i32, i32
  }
  func.func @transform_3(%arg0: i32) -> (i32, i32) {
    %c0_i32 = arith.constant 0 : i32
    %c0_i32_0 = arith.constant 0 : i32
    %c0_i32_1 = arith.constant 0 : i32
    return %c0_i32, %c0_i32_0 : i32, i32
  }
  func.func @transform_4(%arg0: i32) -> (i32, i32) {
    %c0_i32 = arith.constant 0 : i32
    %c0_i32_0 = arith.constant 0 : i32
    %c0_i32_1 = arith.constant 0 : i32
    return %c0_i32, %c0_i32_0 : i32, i32
  }
  func.func @transform_5(%arg0: i32) -> (i32, i32, i32) {
    %c0_i32 = arith.constant 0 : i32
    %c0_i32_0 = arith.constant 0 : i32
    %c0_i32_1 = arith.constant 0 : i32
    return %arg0, %c0_i32, %c0_i32_0 : i32, i32, i32
  }
  func.func @transform_6(%arg0: i32) -> (i32, i32, i32) {
    %c0_i32 = arith.constant 0 : i32
    %c0_i32_0 = arith.constant 0 : i32
    %c0_i32_1 = arith.constant 0 : i32
    return %arg0, %c0_i32, %c0_i32_0 : i32, i32, i32
  }
}

</mosaic_0001>

<bundles_post_ra>
// kernel: tpu_custom_call.1
= control target key start
LH: loop header
LB: loop body
LE: loop exit
PB: predicated region body
PF: predicated region fallthrough
CT: control target
= control target key end

     0   :  { %12 = vsyncpa [#allocation5], 0  ;;  %s3338_s0 = inlined_call_operand.vmem [shape: bf16[2,4,256], index: 0, kind: input, shape index: {}]   ;;  %s3339_s1 = inlined_call_operand.vmem [shape: bf16[2,32,256], index: 1, kind: input, shape index: {}]   ;;  %s3340_s2 = inlined_call_operand.vmem [shape: f32[2,32,256], index: 2, kind: input, shape index: {}]   ;;  %s3341_s3 = inlined_call_operand.vmem [shape: bf16[128,432], index: 3, kind: input, shape index: {}]   ;;  %s3342_s4 = inlined_call_operand.vmem [shape: f32[128,1], index: 4, kind: input, shape index: {}]   ;;  %s3343_s5 = inlined_call_operand.hbm [shape: f32[2,32,256], index: 5, kind: output, shape index: {0}]   ;;  %s3344_s6 = inlined_call_operand.hbm [shape: f32[2,32,256], index: 6, kind: output, shape index: {1}]  }
   0x1   :  { %14 = vsyncpa [#allocation5 + $0x1], 0 }
   0x2   :  { %15 = vsyncpa [#allocation7], 0 }
   0x3   :  { %17 = vsyncpa [#allocation7 + $0x1], 0  ;;  %s2497_s21 = smov 0   ;;  %s2499_s22 = smov 0  }
   0x4   :  { %s2501_s23 = smov 0   ;;  %s2503_s24 = smov 0  }
   0x5 LB: > { %s2518_s25 = sadd.s32 4294967295, %s2448_s24   ;;  %s1938_s26 = sadd.s32 4294967294, %s2448_s24   ;;  %s2448_s24 = sphi %s2503_s24, %s3350_s24   ;;  %s2444_s23 = sphi %s2501_s23, %s3349_s23   ;;  %s2440_s22 = sphi %s2499_s22, %s3348_s22   ;;  %s2436_s21 = sphi %s2497_s21, %s3347_s21  }
   0x6   : > { %s2522_s27 = sadd.s32 1, %s2448_s24   ;;  %s150_s28 = sadd.s32 1, %s2444_s23 }
   0x7   : > { %s147_s29 = ssub.s32 %s2448_s24, %s2522_s27  ;;  %p160_p0 = scmp.ne.s32.totalorder %s2444_s23, %s2440_s22 }
   0x8   : > { %p148_p1 = scmp.eq.s32.totalorder %s147_s29, 0  ;;  %p161_p2 = scmp.eq.s32.totalorder %s2518_s25, 1 }
   0x9   : > { %p166_p3 = scmp.ne.s32.totalorder %s2440_s22, %s2436_s21  ;;  %p167_p4 = scmp.eq.s32.totalorder %s1938_s26, 1 }
   0xa   : > { %s2533_s30 = scalar_select %p148_p1, %s2444_s23, %s150_s28  }
   0xb   : > { %p2535_p5 = por %p161_p2, %p160_p0  ;;  %p2539_p6 = por %p167_p4, %p166_p3 }
   0xc   : > { %p1941_p7 = scmp.ge.s32.totalorder %s2448_s24, 1  ;;  %p241_p8 = scmp.lt.s32.totalorder %s2448_s24, 3 }
   0xe   : > { %p242_p9 = pnand %p1941_p7, %p241_p8 }
   0xf   : > { %v407_v0 = vlaneseq (!%p242_p9)  ;;  %vm307_vm0 = vcmask (!%p242_p9), 138240   ;;  %v2450_v1 = vmov (!%p242_p9), 0   ;;  %p286_p10 = scmp.lt.s32.totalorder (!%p242_p9), %s2518_s25, 1  ;;  %s2451_s18 = smov (!%p242_p9), 111   ;;  %vm573_vm12 = vcmask (!%p242_p9), 130048  }
  0x10   : > { %245 = sbr.rel (%p242_p9) target bundleno = 716 (0x2cc), region = 40  ;;  %314 = vst [vmem:[#allocation2 + $0x48] sm:$0xff] (!%p242_p9), %v2450_v1  ;;  %315 = vst [vmem:[#allocation2 + $0x50] sm:$0xff] (!%p242_p9), %v2450_v1  ;;  %2170 = vset.pattern.permute.xlu0 (!%p242_p9), %v2450_v1  ;;  %2171 = vset.pattern.permute.xlu1 (!%p242_p9), %v2450_v1  ;;  %s2452_s19 = smov (!%p242_p9), 1   ;;  %vm477_vm15 = vcmask (!%p242_p9), 908288  }
  0x11   : > { %308 = vst.msk [vmem:[#allocation2 + $0x18] sm:$0xff] (!%p242_p9), %vm307_vm0, %v2450_v1  ;;  %312 = vst.msk [vmem:[#allocation2 + $0x38] sm:$0xff] (!%p242_p9), %vm307_vm0, %v2450_v1  ;;  %v408_v2 = vand.u32 (!%p242_p9), 127, %v407_v0  ;;  %v466_v5 = vshrl.u32 (!%p242_p9), %v407_v0, 7  ;;  %s2453_s20 = smov (!%p242_p9), 113   ;;  %s2454_s26 = smov (!%p242_p9), 15  }
  0x12   : > { %316 = vst.msk [vmem:[#allocation2 + $0x58] sm:$0xff] (!%p242_p9), %vm307_vm0, %v2450_v1  ;;  %s2455_s28 = smov (!%p242_p9), 127   ;;  %s2456_s29 = smov (!%p242_p9), 17  }
  0x13   : > { %v409_v3 = vadd.s32 (!%p242_p9), 128, %v408_v2  ;;  %v414_v4 = vand.u32 (!%p242_p9), 15, %v408_v2  ;;  %v467_v11 = vsub.s32 (!%p242_p9), 0, %v466_v5  ;;  %v471_v14 = vsub.s32 (!%p242_p9), 4, %v466_v5 }
  0x15   : > { %v421_v6 = vand.u32 (!%p242_p9), 15, %v409_v3  ;;  %v434_v7 = vadd.s32 (!%p242_p9), 4294967295, %v414_v4  ;;  %v442_v8 = vadd.s32 (!%p242_p9), 1, %v414_v4 }
  0x17   : > { %s2557_s9 = scalar_select %p286_p10, %s2518_s25, 1  ;;  %v435_v9 = vadd.s32 4294967295, %v421_v6  ;;  %vm436_vm1 = vcmp.ge.s32.totalorder %v434_v7, 0  ;;  %v443_v10 = vadd.s32 1, %v421_v6  ;;  %vm446_vm2 = vcmp.lt.s32.totalorder %v442_v8, 16 }
  0x18   : > { %v2609_v27 = vld [vmem:[#allocation2 + $0x18] sm:$0xff] }
  0x19   : > { %s2028_s10 = sshll.u32 %s2557_s9, 5  ;;  %s2027_s11 = sshll.u32 %s2557_s9, 2  ;;  %vm437_vm3 = vcmp.ge.s32.totalorder %v435_v9, 0  ;;  %vm447_vm4 = vcmp.lt.s32.totalorder %v443_v10, 16  ;;  %v2635_v36 = vld [vmem:[#allocation2 + $0x38] sm:$0xff] }
  0x1a   : > { %s295_s14 = scalar_lea.vmem %s3339_s1, %s2028_s10  ;;  %s290_s17 = scalar_lea.vmem %s3338_s0, %s2027_s11  ;;  %vm463_vm5 = vmpackc.low %vm437_vm3, %vm436_vm1  ;;  %v2664_v45 = vld [vmem:[#allocation2 + $0x58] sm:$0xff]  ;;  %vm733_vm3 = vcmask 7168  }
  0x1b   : > { %v2564_v12 = vld [vmem:[%s295_s14] ss:$8 sps:$4 sm:$0xff]   ;;  %v2569_v13 = vld [vmem:[%s295_s14 + $0x4] ss:$8 sps:$4 sm:$0xff]   ;;  %v2571_v15 = vld [vmem:[%s295_s14 + $0x10] ss:$8 sps:$4 sm:$0xff]  }
  0x1c   : > { %v2573_v16 = vld [vmem:[%s295_s14 + $0x14] ss:$8 sps:$4 sm:$0xff]   ;;  %v464_v17 = vsel %vm463_vm5, 65537, %v2450_v1  ;;  %vm605_vm6 = vmpackc.low %vm447_vm4, %vm446_vm2  ;;  %s2457_s10 = smov 16   ;;  %s2458_s11 = smov 112   ;;  %vm619_vm2 = vcmask 924672  }
  0x1d   : > { %v1954_v18 = vld.sshfl [vmem:[%s290_s17] sm:$0x33 pattern:$0x76325410]  ;;  %v468_v19 = vrot.slane %v464_v17, %v467_v11  ;;  %v606_v20 = vsel %vm605_vm6, 65537, %v2450_v1  ;;  %v472_v23 = vrot.slane %v464_v17, %v471_v14  ;;  %vm660_vm6 = vcmask 121856  }
  0x1e   : > { %357 = vst [vmem:[#allocation2 + $0x48] sm:$0x3] %v1954_v18  ;;  %v354_v21 = vcombine.high %v1954_v18, %v1954_v18  ;;  %v610_v22 = vrot.slane %v606_v20, %v467_v11  ;;  %v614_v24 = vrot.slane %v606_v20, %v471_v14  ;;  %s2029_s17 = sshll.u32 %s2557_s9, 6  ;;  %s3191_s9 = sand.u32 1, %s2440_s22  }
  0x1f   : > { %473 = vrot.lane.b32.xlu0 %v468_v19, %s2451_s18  ;;  %s1791_s16 = scalar_lea.sflag [#allocation7], %s3191_s9 }
  0x20   : > { %358 = vst [vmem:[#allocation2 + $0x50] sm:$0x3] %v354_v21  ;;  %773 = vrot.lane.b32.xlu1 %v610_v22, %s2452_s19 }
  0x23   : > { %475 = vrot.lane.b32.xlu0 %v472_v23, %s2451_s18 }
  0x24   : > { %775 = vrot.lane.b32.xlu1 %v614_v24, %s2452_s19 }
  0x25   : > { %v2597_v25 = vld [vmem:[#allocation2 + $0x48] sm:$0xff] }
  0x27   : > { %615 = vrot.lane.b32.xlu0 %v610_v22, %s2453_s20  ;;  %v2603_v26 = vld [vmem:[#allocation2 + $0x50] sm:$0xff] }
  0x28   : > { %617 = vrot.lane.b32.xlu1 %v614_v24, %s2453_s20 }
  0x2b   : > { %844 = vrot.lane.b32.xlu0 %v468_v19, %s2454_s26 }
  0x2c   : > { %846 = vrot.lane.b32.xlu1 %v472_v23, %s2454_s26 }
  0x2f   : > { %688 = vrot.lane.b32.xlu0 %v468_v19, %s2455_s28 }
  0x30   : > { %690 = vrot.lane.b32.xlu1 %v472_v23, %s2455_s28 }
  0x33   : > { %970 = vrot.lane.b32.xlu0 %v610_v22, %s2456_s29 }
  0x34   : > { %972 = vrot.lane.b32.xlu1 %v614_v24, %s2456_s29 }
  0x37   : > { %557 = vrot.lane.b32.xlu0 %v2564_v12, %s2457_s10 }
  0x38   : > { %559 = vrot.lane.b32.xlu1 %v2569_v13, %s2457_s10 }
  0x3b   : > { %2151 = vrot.lane.b32.xlu0 %v2450_v1, %s2457_s10 }
  0x3c   : > { %563 = vrot.lane.b32.xlu1 %v2571_v15, %s2457_s10 }
  0x3f   : > { %565 = vrot.lane.b32.xlu0 %v2573_v16, %s2457_s10 }
  0x40   : > { %569 = vrot.lane.b32.xlu1 %v2597_v25, %s2457_s10 }
  0x43   : > { %571 = vrot.lane.b32.xlu0 %v2603_v26, %s2457_s10 }
  0x44   : > { %567 = vrot.lane.b32.xlu1 %v2450_v1, %s2457_s10 }
  0x47   : > { %926 = vrot.lane.b32.xlu0 %v2569_v13, %s2458_s11 }
  0x48   : > { %928 = vrot.lane.b32.xlu1 %v2609_v27, %s2458_s11 }
  0x4b   : > { %2156 = vrot.lane.b32.xlu0 %v2450_v1, %s2456_s29 }
  0x91   : > { %v2615_v28 = vpop.permute.xlu0 %473 }
  0x92   : > { %v2617_v29 = vpop.permute.xlu1 %773 }
  0x93   : > { %vm778_vm9 = vcmp.ne.s16.totalorder %v2617_v29, 0 }
  0x94   : > { %v784_v41 = vsel %vm778_vm9, %v2571_v15, 0  ;;  %v787_v49 = vsel %vm778_vm9, %v2597_v25, 0 }
  0x95   : > { %v2619_v30 = vpop.permute.xlu0 %475 }
  0x96   : > { %vm481_vm7 = vcmp.ne.s16.totalorder %v2619_v30, 0  ;;  %v2624_v31 = vpop.permute.xlu1 %775  ;;  %v478_v11 = vsel %vm477_vm15, %v2615_v28, %v2619_v30 }
  0x97   : > { %v484_v32 = vsel %vm481_vm7, %v2569_v13, 0  ;;  %v487_v33 = vsel %vm481_vm7, %v2573_v16, 0  ;;  %vm780_vm8 = vcmp.ne.s16.totalorder %v2624_v31, 0  ;;  %v490_v37 = vsel %vm481_vm7, %v2603_v26, 0 }
  0x98   : > { %504 = vrot.lane.b32.xlu1 %v484_v32, %s2456_s29  ;;  %510 = vrot.lane.b32.xlu0 %v487_v33, %s2456_s29  ;;  %v786_v38 = vsel %vm780_vm8, %v2635_v36, 0  ;;  %v789_v48 = vsel %vm780_vm8, %v2664_v45, 0  ;;  %vm480_vm1 = vcmp.ne.s16.totalorder %v478_v11, 0  ;;  %v777_v22 = vsel %vm733_vm3, %v2617_v29, %v2624_v31 }
  0x99   : > { %v2629_v34 = vpop.permute.xlu0 %615  ;;  %v483_v18 = vsel %vm480_vm1, %v2564_v12, 0  ;;  %v486_v19 = vsel %vm480_vm1, %v2571_v15, 0  ;;  %vm779_vm5 = vcmp.ne.s16.totalorder %v777_v22, 0 }
  0x9a   : > { %v2633_v35 = vpop.permute.xlu1 %617  ;;  %v785_v28 = vsel %vm779_vm5, %v2573_v16, 0  ;;  %v788_v32 = vsel %vm779_vm5, %v2603_v26, 0 }
  0x9b   : > { %vm623_vm10 = vcmp.ne.s16.totalorder %v2633_v35, 0  ;;  %v620_v21 = vsel %vm619_vm2, %v2629_v34, %v2633_v35 }
  0x9c   : > { %512 = vrot.lane.b32.xlu1 %v2450_v1, %s2456_s29  ;;  %516 = vrot.lane.b32.xlu0 %v490_v37, %s2456_s29  ;;  %v626_v44 = vsel %vm623_vm10, %v2569_v13, 0  ;;  %v629_v54 = vsel %vm623_vm10, %v2573_v16, 0  ;;  %v632_v59 = vsel %vm623_vm10, %v2603_v26, 0  ;;  %vm622_vm4 = vcmp.ne.s16.totalorder %v620_v21, 0 }
  0x9d   : > { %v2643_v39 = vpop.permute.xlu0 %844  ;;  %v625_v23 = vsel %vm622_vm4, %v2564_v12, 0  ;;  %v628_v30 = vsel %vm622_vm4, %v2571_v15, 0  ;;  %vm692_vm10 = vcmask 1039360   ;;  %v631_v35 = vsel %vm622_vm4, %v2597_v25, 0 }
  0x9e   : > { %v2647_v40 = vpop.permute.xlu1 %846  ;;  %vm849_vm11 = vcmp.ne.s16.totalorder %v2643_v39, 0 }
  0x9f   : > { %v852_v50 = vsel %vm849_vm11, %v2564_v12, 0  ;;  %vm851_vm13 = vcmp.ne.s16.totalorder %v2647_v40, 0  ;;  %v855_v3 = vsel %vm849_vm11, %v2571_v15, 0  ;;  %v858_v10 = vsel %vm849_vm11, %v2597_v25, 0 }
  0xa0   : > { %809 = vrot.lane.b32.xlu1 %v786_v38, %s2455_s28  ;;  %805 = vrot.lane.b32.xlu0 %v784_v41, %s2455_s28  ;;  %v854_v60 = vsel %vm851_vm13, %v2609_v27, 0  ;;  %v857_v9 = vsel %vm851_vm13, %v2635_v36, 0  ;;  %v860_v17 = vsel %vm851_vm13, %v2664_v45, 0  ;;  %v848_v24 = vsel %vm660_vm6, %v2643_v39, %v2647_v40 }
  0xa1   : > { %v2654_v42 = vpop.permute.xlu0 %688  ;;  %vm850_vm7 = vcmp.ne.s16.totalorder %v848_v24, 0 }
  0xa2   : > { %v2657_v43 = vpop.permute.xlu1 %690  ;;  %v853_v34 = vsel %vm850_vm7, %v2569_v13, 0  ;;  %v856_v37 = vsel %vm850_vm7, %v2573_v16, 0  ;;  %v859_v40 = vsel %vm850_vm7, %v2603_v26, 0 }
  0xa3   : > { %vm696_vm14 = vcmp.ne.s16.totalorder %v2657_v43, 0  ;;  %v693_v33 = vsel %vm692_vm10, %v2654_v42, %v2657_v43 }
  0xa4   : > { %2161 = vrot.lane.b32.xlu1 %v2450_v1, %s2454_s26  ;;  %646 = vrot.lane.b32.xlu0 %v626_v44, %s2454_s26  ;;  %v699_v4 = vsel %vm696_vm14, %v2569_v13, 0  ;;  %v702_v14 = vsel %vm696_vm14, %v2573_v16, 0  ;;  %v705_v20 = vsel %vm696_vm14, %v2603_v26, 0  ;;  %vm695_vm11 = vcmp.ne.s16.totalorder %v693_v33, 0 }
  0xa5   : > { %v2666_v46 = vpop.permute.xlu0 %970  ;;  %v698_v38 = vsel %vm695_vm11, %v2564_v12, 0  ;;  %v701_v41 = vsel %vm695_vm11, %v2571_v15, 0  ;;  %v704_v42 = vsel %vm695_vm11, %v2597_v25, 0 }
  0xa6   : > { %v2670_v47 = vpop.permute.xlu1 %972  ;;  %vm975_vm14 = vcmp.ne.s16.totalorder %v2666_v46, 0 }
  0xa7   : > { %v974_v39 = vsel %vm307_vm0, %v2666_v46, %v2670_v47  ;;  %vm977_vm13 = vcmp.ne.s16.totalorder %v2670_v47, 0  ;;  %v984_v29 = vsel %vm975_vm14, %v2597_v25, 0 }
  0xa8   : > { %815 = vrot.lane.b32.xlu1 %v789_v48, %s2455_s28  ;;  %811 = vrot.lane.b32.xlu0 %v787_v49, %s2455_s28  ;;  %v980_v44 = vsel %vm977_vm13, %v2609_v27, 0  ;;  %v978_v48 = vsel %vm975_vm14, %v2564_v12, 0 }
  0xa9   : > { %v558_v51 = vpop.permute.xlu0 %557 }
  0xaa   : > { %v560_v52 = vpop.permute.xlu1 %559 }
  0xab   : > { %v2684_v53 = vsel %vm573_vm12, %v558_v51, %v560_v52  ;;  %v981_v52 = vsel %vm975_vm14, %v2571_v15, 0 }
  0xac   : > { %870 = vrot.lane.b32.xlu1 %v852_v50, %s2453_s20  ;;  %652 = vrot.lane.b32.xlu0 %v629_v54, %s2454_s26  ;;  %v983_v50 = vsel %vm977_vm13, %v2635_v36, 0  ;;  %v2183_v54 = vld [vmem:[%s3341_s3 + $0xc] ss:$16 sps:$4 sm:$0xff]  }
  0xad   : > { %v2152_v55 = vpop.permute.xlu0 %2151 }
  0xae   : > { %v2154_v56 = vunpack.i.h.bf16 %v2152_v55  ;;  %v2153_v57 = vunpack.i.l.bf16 %v2152_v55  ;;  %v564_v58 = vpop.permute.xlu1 %563  ;;  %v783_v55 = vsel %vm780_vm8, %v2609_v27, 0  ;;  %v986_v27 = vsel %vm977_vm13, %v2664_v45, 0 }
  0xb0   : > { %658 = vrot.lane.b32.xlu1 %v632_v59, %s2454_s26  ;;  %v2700_v61 = vsel %vm573_vm12, %v2153_v57, %v558_v51  ;;  %v2703_v62 = vsel %vm573_vm12, %v2154_v56, %v564_v58  ;;  %874 = vrot.lane.b32.xlu0 %v854_v60, %s2453_s20  ;;  %v2180_v51 = vld [vmem:[%s3341_s3 + $0x4] ss:$16 sps:$4 sm:$0xff]   ;;  %v781_v56 = vsel %vm778_vm9, %v2564_v12, 0 }
  0xb1   : > { %v566_v63 = vpop.permute.xlu0 %565  ;;  %1375 = vmatprep.mubr.bf16.mxu1 %v2180_v51  ;;  %v397_v51 = vld [vmem:[%s3342_s4 + $0x30] sm:$0xff] }
  0xb2   : > { %v570_v0 = vpop.permute.xlu1 %569  ;;  %v2708_v2 = vsel %vm573_vm12, %v564_v58, %v566_v63 }
  0xb4   : > { %876 = vrot.lane.b32.xlu1 %v855_v3, %s2453_s20  ;;  %654 = vrot.lane.b32.xlu0 %v2450_v1, %s2454_s26 }
  0xb5   : > { %v572_v5 = vpop.permute.xlu0 %571 }
  0xb6   : > { %v568_v6 = vpop.permute.xlu1 %567  ;;  %v2720_v7 = vsel %vm573_vm12, %v570_v0, %v572_v5 }
  0xb7   : > { %v2723_v8 = vsel %vm573_vm12, %v568_v6, %v570_v0  ;;  %vm976_vm12 = vcmp.ne.s16.totalorder %v974_v39, 0 }
  0xb8   : > { %719 = vrot.lane.b32.xlu1 %v699_v4, %s2452_s19  ;;  %880 = vrot.lane.b32.xlu0 %v857_v9, %s2453_s20  ;;  %v979_v43 = vsel %vm976_vm12, %v2569_v13, 0  ;;  %v982_v49 = vsel %vm976_vm12, %v2573_v16, 0  ;;  %v985_v58 = vsel %vm976_vm12, %v2603_v26, 0 }
  0xb9   : > { %v2860_v57 = vpop.permute.xlu0 %926 }
  0xba   : > { %v2865_v59 = vpop.permute.xlu1 %928 }
  0xbc   : > { %882 = vrot.lane.b32.xlu1 %v858_v10, %s2453_s20  ;;  %2166 = vrot.lane.b32.xlu0 %v2450_v1, %s2452_s19 }
  0xbd   : > { %v2157_v31 = vpop.permute.xlu0 %2156 }
  0xc0   : > { %725 = vrot.lane.b32.xlu1 %v702_v14, %s2452_s19  ;;  %886 = vrot.lane.b32.xlu0 %v860_v17, %s2453_s20 }
  0xc4   : > { %727 = vrot.lane.b32.xlu1 %v2450_v1, %s2452_s19  ;;  %502 = vrot.lane.b32.xlu0 %v483_v18, %s2456_s29  ;;  %v489_v1 = vsel %vm480_vm1, %v2597_v25, 0  ;;  %vm1318_vm1 = vcmask 392192  }
  0xc5   : > { %1987 = vmatprep.mubr.msk.bf16.mxu0 %vm1318_vm1, %v2183_v54  ;;  %v398_v54 = vld [vmem:[%s3342_s4 + $0x38] sm:$0xff] }
  0xc8   : > { %934 = vrot.lane.b32.xlu1 %v2635_v36, %s2458_s11  ;;  %924 = vrot.lane.b32.xlu0 %v2564_v12, %s2458_s11  ;;  %v782_v36 = vsel %vm779_vm5, %v2569_v13, 0 }
  0xcc   : > { %508 = vrot.lane.b32.xlu1 %v486_v19, %s2456_s29  ;;  %731 = vrot.lane.b32.xlu0 %v705_v20, %s2452_s19 }
  0xd0   : > { %514 = vrot.lane.b32.xlu1 %v489_v1, %s2456_s29  ;;  %932 = vrot.lane.b32.xlu0 %v2573_v16, %s2458_s11  ;;  %s2030_s29 = sshll.u32 %s2518_s25, 10 }
  0xd1   : > { %s3245_s15 = scalar_lea.hbm %s3344_s6, %s2030_s29 }
  0xd4   : > { %938 = vrot.lane.b32.xlu1 %v2603_v26, %s2458_s11  ;;  %930 = vrot.lane.b32.xlu0 %v2571_v15, %s2458_s11 }
  0xd8   : > { %936 = vrot.lane.b32.xlu1 %v2597_v25, %s2458_s11  ;;  %940 = vrot.lane.b32.xlu0 %v2664_v45, %s2458_s11 }
  0xdc   : > { %644 = vrot.lane.b32.xlu1 %v625_v23, %s2454_s26  ;;  %807 = vrot.lane.b32.xlu0 %v785_v28, %s2455_s28  ;;  %v2158_v28 = vunpack.i.l.bf16 %v2157_v31 }
  0xe0   : > { %650 = vrot.lane.b32.xlu1 %v628_v30, %s2454_s26  ;;  %813 = vrot.lane.b32.xlu0 %v788_v32, %s2455_s28  ;;  %v391_v30 = vld [vmem:[%s3342_s4] sm:$0xff]  ;;  %v392_v32 = vld [vmem:[%s3342_s4 + $0x8] sm:$0xff] }
  0xe4   : > { %872 = vrot.lane.b32.xlu1 %v853_v34, %s2453_s20  ;;  %656 = vrot.lane.b32.xlu0 %v631_v35, %s2454_s26  ;;  %s1942_s26 = sshll.u32 %s3191_s9, 6 }
  0xe5   : > { %s3235_s12 = scalar_lea.vmem [#allocation4], %s1942_s26 }
  0xe8   : > { %878 = vrot.lane.b32.xlu1 %v856_v37, %s2453_s20  ;;  %717 = vrot.lane.b32.xlu0 %v698_v38, %s2452_s19  ;;  %v393_v37 = vld [vmem:[%s3342_s4 + $0x10] sm:$0xff]  ;;  %v394_v38 = vld [vmem:[%s3342_s4 + $0x18] sm:$0xff] }
  0xec   : > { %884 = vrot.lane.b32.xlu1 %v859_v40, %s2453_s20  ;;  %723 = vrot.lane.b32.xlu0 %v701_v41, %s2452_s19  ;;  %v2159_v41 = vunpack.i.h.bf16 %v2157_v31  ;;  %s3188_s20 = scalar_lea.vmem %s3340_s2, %s2029_s17 }
  0xf0   : > { %729 = vrot.lane.b32.xlu1 %v704_v42, %s2452_s19  ;;  %998 = vrot.lane.b32.xlu0 %v979_v43, %s2451_s18  ;;  %v395_v42 = vld [vmem:[%s3342_s4 + $0x20] sm:$0xff] }
  0xf4   : > { %1000 = vrot.lane.b32.xlu1 %v980_v44, %s2451_s18  ;;  %996 = vrot.lane.b32.xlu0 %v978_v48, %s2451_s18  ;;  %v396_v44 = vld [vmem:[%s3342_s4 + $0x28] sm:$0xff] }
  0xf8   : > { %1004 = vrot.lane.b32.xlu1 %v982_v49, %s2451_s18  ;;  %1006 = vrot.lane.b32.xlu0 %v983_v50, %s2451_s18 }
  0xfc   : > { %1002 = vrot.lane.b32.xlu1 %v981_v52, %s2451_s18  ;;  %801 = vrot.lane.b32.xlu0 %v782_v36, %s2455_s28 }
 0x100   : > { %803 = vrot.lane.b32.xlu1 %v783_v55, %s2455_s28  ;;  %799 = vrot.lane.b32.xlu0 %v781_v56, %s2455_s28  ;;  %s3207_s28 = scalar_lea.vmem [#allocation6], %s1942_s26 }
 0x101   : > { %s1820_s11 = sshll.u32 %s3207_s28, 4  ;;  %s3247_s11 = int_to_ptr.vmem [resolvable:$true] %s1820_s11 }
 0x102   : > { %s2354_s17 = scalar_lea.vmem %s3247_s11, 1024 }
 0x103   : > { %p2355_p11 = scmp.ne.s32.totalorder %s3247_s11, %s2354_s17 }
 0x104   : > { %1010 = vrot.lane.b32.xlu1 %v985_v58, %s2451_s18  ;;  %1012 = vrot.lane.b32.xlu0 %v986_v27, %s2451_s18  ;;  %v399_v58 = vld [vmem:[%s3342_s4 + $0x40] sm:$0xff] }
 0x105   : > { %p2356_p12 = pnand %p2355_p11, %p2535_p5 }
 0x107   : > { %p2357_p13 = pneg %p2356_p12 }
 0x108   : > { %1008 = vrot.lane.b32.xlu1 %v984_v29, %s2451_s18  ;;  %1088 = vperm.xlu0 %2170, %v391_v30   ;;  %v400_v29 = vld [vmem:[%s3342_s4 + $0x48] sm:$0xff]  ;;  %s2459_s18 = smov [#allocation6]  }
 0x109   : > { %s2358_s19 = sshll.u32 %s2459_s18, 4  ;;  %s2359_s19 = int_to_ptr.vmem [resolvable:$false] %s2358_s19 }
 0x10a   : > { %v505_v60 = vpop.permute.xlu1 %504  ;;  %v511_v63 = vpop.permute.xlu0 %510  ;;  %p2361_p0 = scmp.lt.s32.totalorder %s3247_s11, %s2359_s19 }
 0x10c   : > { %1093 = vperm.xlu1 %2171, %v392_v32   ;;  %1103 = vperm.xlu0 %2170, %v394_v38  }
 0x10e   : > { %v513_v0 = vpop.permute.xlu1 %512  ;;  %v517_v3 = vpop.permute.xlu0 %516 }
 0x110   : > { %1098 = vperm.xlu1 %2171, %v393_v37   ;;  %1113 = vperm.xlu0 %2170, %v396_v44  }
 0x112   : > { %v2875_v4 = vpop.permute.xlu1 %809  ;;  %v2877_v5 = vpop.permute.xlu0 %805 }
 0x114   : > { %1108 = vperm.xlu1 %2171, %v395_v42   ;;  %1123 = vperm.xlu0 %2170, %v398_v54  }
 0x116   : > { %v2879_v6 = vpop.permute.xlu1 %2161  ;;  %v2881_v45 = vpop.permute.xlu0 %646 }
 0x117   : > { %v2164_v38 = vunpack.i.h.bf16 %v2879_v6 }
 0x118   : > { %1118 = vperm.xlu1 %2171, %v397_v51   ;;  %1133 = vperm.xlu0 %2170, %v400_v29  }
 0x11a   : > { %v2883_v47 = vpop.permute.xlu1 %815  ;;  %v2885_v9 = vpop.permute.xlu0 %811 }
 0x11c   : > { %1128 = vperm.xlu1 %2171, %v399_v58  }
 0x11e   : > { %v2887_v46 = vpop.permute.xlu1 %870  ;;  %v2889_v10 = vpop.permute.xlu0 %652 }
 0x122   : > { %v2891_v11 = vpop.permute.xlu1 %658  ;;  %v2893_v14 = vpop.permute.xlu0 %874 }
 0x126   : > { %v2895_v17 = vpop.permute.xlu1 %876  ;;  %v2897_v18 = vpop.permute.xlu0 %654 }
 0x12a   : > { %v2899_v19 = vpop.permute.xlu1 %719  ;;  %v2901_v20 = vpop.permute.xlu0 %880 }
 0x12e   : > { %v2903_v1 = vpop.permute.xlu1 %882  ;;  %v2905_v21 = vpop.permute.xlu0 %2166 }
 0x132   : > { %v2907_v22 = vpop.permute.xlu1 %725  ;;  %v2909_v23 = vpop.permute.xlu0 %886 }
 0x136   : > { %v2911_v24 = vpop.permute.xlu1 %727  ;;  %v503_v33 = vpop.permute.xlu0 %502 }
 0x137   : > { %v520_v34 = vsel %vm307_vm0, %v503_v33, %v505_v60  ;;  %v519_v35 = vsel %vm307_vm0, %v2158_v28, %v503_v33  ;;  %v401_v60 = vld [vmem:[%s3342_s4 + $0x50] sm:$0xff]  ;;  %v2163_v33 = vunpack.i.l.bf16 %v2879_v6 }
 0x138   : > { %1343 = vmatprep.subr.bf16.mxu1 %v520_v34  ;;  %1138 = vperm.xlu1 %2171, %v401_v60  }
 0x139   : > { %1344 = vmatpush1.bf16.msra.mxu1 %v519_v35 }
 0x13a   : > { %v2927_v39 = vpop.permute.xlu1 %934  ;;  %v2929_v40 = vpop.permute.xlu0 %924 }
 0x13e   : > { %v509_v43 = vpop.permute.xlu1 %508  ;;  %v2939_v50 = vpop.permute.xlu0 %731 }
 0x13f   : > { %v522_v48 = vsel %vm307_vm0, %v509_v43, %v511_v63  ;;  %v521_v49 = vsel %vm307_vm0, %v2159_v41, %v509_v43 }
 0x140   : > { %1345 = vmatprep.subr.bf16.mxu1 %v522_v48 }
 0x141   : > { %1346 = vmatpush1.bf16.msra.mxu1 %v521_v49 }
 0x142   : > { %v515_v52 = vpop.permute.xlu1 %514  ;;  %v2949_v56 = vpop.permute.xlu0 %932 }
 0x143   : > { %v524_v36 = vsel %vm307_vm0, %v515_v52, %v517_v3  ;;  %v523_v55 = vsel %vm307_vm0, %v513_v0, %v515_v52  ;;  %vm942_vm0 = vcmask 916480  }
 0x144   : > { %1347 = vmatprep.subr.bf16.mxu1 %v524_v36 }
 0x145   : > { %1348 = vmatpush1.bf16.msra.mxu1 %v523_v55 }
 0x146   : > { %v2954_v27 = vpop.permute.xlu1 %938  ;;  %1349 = vmatprep.subr.bf16.mxu1 %v2684_v53  ;;  %v2960_v31 = vpop.permute.xlu0 %930  ;;  %v402_v53 = vld [vmem:[%s3342_s4 + $0x58] sm:$0xff] }
 0x147   : > { %1143 = vperm.xlu0 %2170, %v402_v53  }
 0x149   : > { %1350 = vmatpush1.bf16.msra.mxu1 %v2700_v61  ;;  %v403_v61 = vld [vmem:[%s3342_s4 + $0x60] sm:$0xff] }
 0x14a   : > { %v2966_v63 = vpop.permute.xlu1 %936  ;;  %1351 = vmatprep.subr.bf16.mxu1 %v2708_v2  ;;  %v2972_v0 = vpop.permute.xlu0 %940  ;;  %v404_v2 = vld [vmem:[%s3342_s4 + $0x68] sm:$0xff]  ;;  %1148 = vperm.xlu1 %2171, %v403_v61  }
 0x14b   : > { %1153 = vperm.xlu0 %2170, %v404_v2  }
 0x14d   : > { %1352 = vmatpush1.bf16.msra.mxu1 %v2703_v62 }
 0x14e   : > { %v645_v3 = vpop.permute.xlu1 %644  ;;  %1353 = vmatprep.subr.bf16.mxu1 %v2720_v7  ;;  %v808_v28 = vpop.permute.xlu0 %807  ;;  %v405_v7 = vld [vmem:[%s3342_s4 + $0x70] sm:$0xff] }
 0x14f   : > { %v662_v30 = vsel %vm660_vm6, %v645_v3, %v2881_v45  ;;  %v820_v62 = vsel %vm692_vm10, %v808_v28, %v2875_v4  ;;  %v819_v32 = vsel %vm692_vm10, %v2877_v5, %v808_v28  ;;  %v661_v4 = vsel %vm660_vm6, %v2163_v33, %v645_v3  ;;  %1158 = vperm.xlu1 %2171, %v405_v7   ;;  %v2186_v7 = vld [vmem:[%s3341_s3 + $0x20] ss:$16 sps:$4 sm:$0xff]   ;;  %v2190_v33 = vld [vmem:[%s3341_s3 + $0x44] ss:$16 sps:$4 sm:$0xff]  }
 0x150   : > { %1456 = vmatprep.subr.bf16.mxu0 %v820_v62  ;;  %v2181_v62 = vld [vmem:[%s3341_s3 + $0x8] ss:$16 sps:$4 sm:$0xff]  }
 0x151   : > { %1354 = vmatpush1.bf16.msra.mxu1 %v2723_v8  ;;  %v406_v8 = vld [vmem:[%s3342_s4 + $0x78] sm:$0xff]  ;;  %1457 = vmatpush1.bf16.msra.mxu0 %v819_v32 }
 0x152   : > { %v651_v34 = vpop.permute.xlu1 %650  ;;  %1355 = vmatprep.subr.bf16.mxu1 %v662_v30  ;;  %v814_v45 = vpop.permute.xlu0 %813  ;;  %1163 = vperm.xlu0 %2170, %v406_v8   ;;  %v2187_v32 = vld [vmem:[%s3341_s3 + $0x2c] ss:$16 sps:$4 sm:$0xff]  }
 0x153   : > { %v664_v5 = vsel %vm660_vm6, %v651_v34, %v2889_v10  ;;  %v822_v35 = vsel %vm692_vm10, %v814_v45, %v2883_v47  ;;  %v821_v37 = vsel %vm692_vm10, %v2885_v9, %v814_v45  ;;  %v663_v10 = vsel %vm660_vm6, %v2164_v38, %v651_v34  ;;  %v2189_v34 = vld [vmem:[%s3341_s3 + $0x28] ss:$16 sps:$4 sm:$0xff]   ;;  %v2193_v8 = vld [vmem:[%s3341_s3 + $0x4c] ss:$16 sps:$4 sm:$0xff]   ;;  %v2192_v45 = vld [vmem:[%s3341_s3 + $0x40] ss:$16 sps:$4 sm:$0xff]  }
 0x154   : > { %1458 = vmatprep.subr.bf16.mxu0 %v822_v35  ;;  %v2199_v35 = vld [vmem:[%s3341_s3 + $0x6c] ss:$16 sps:$4 sm:$0xff]   ;;  %v2202_v38 = vld [vmem:[%s3341_s3 + $0x84] ss:$16 sps:$4 sm:$0xff]  }
 0x155   : > { %1356 = vmatpush1.bf16.msra.mxu1 %v661_v4  ;;  %1459 = vmatpush1.bf16.msra.mxu0 %v821_v37  ;;  %v2196_v4 = vld [vmem:[%s3341_s3 + $0x64] ss:$16 sps:$4 sm:$0xff]   ;;  %v2198_v37 = vld [vmem:[%s3341_s3 + $0x60] ss:$16 sps:$4 sm:$0xff]  }
 0x156   : > { %v873_v41 = vpop.permute.xlu1 %872  ;;  %1357 = vmatprep.subr.bf16.mxu1 %v664_v5  ;;  %v657_v43 = vpop.permute.xlu0 %656  ;;  %v2195_v5 = vld [vmem:[%s3341_s3 + $0x48] ss:$16 sps:$4 sm:$0xff]  }
 0x157   : > { %v889_v42 = vsel %vm619_vm2, %v873_v41, %v2893_v14  ;;  %v666_v47 = vsel %vm660_vm6, %v657_v43, %v2891_v11  ;;  %v888_v6 = vsel %vm619_vm2, %v2887_v46, %v873_v41  ;;  %v665_v14 = vsel %vm660_vm6, %v2897_v18, %v657_v43  ;;  %v2201_v41 = vld [vmem:[%s3341_s3 + $0x68] ss:$16 sps:$4 sm:$0xff]   ;;  %v2204_v43 = vld [vmem:[%s3341_s3 + $0x80] ss:$16 sps:$4 sm:$0xff]  }
 0x158   : > { %1460 = vmatprep.subr.bf16.mxu0 %v889_v42  ;;  %v2168_v11 = vunpack.i.l.bf16 %v2905_v21  ;;  %v2205_v42 = vld [vmem:[%s3341_s3 + $0x8c] ss:$16 sps:$4 sm:$0xff]  }
 0x159   : > { %1358 = vmatpush1.bf16.msra.mxu1 %v663_v10  ;;  %1461 = vmatpush1.bf16.msra.mxu0 %v888_v6  ;;  %v2208_v10 = vld [vmem:[%s3341_s3 + $0xa4] ss:$16 sps:$4 sm:$0xff]   ;;  %v2210_v6 = vld [vmem:[%s3341_s3 + $0xa0] ss:$16 sps:$4 sm:$0xff]  }
 0x15a   : > { %v879_v44 = vpop.permute.xlu1 %878  ;;  %1359 = vmatprep.subr.bf16.mxu1 %v666_v47  ;;  %v718_v48 = vpop.permute.xlu0 %717  ;;  %v2207_v47 = vld [vmem:[%s3341_s3 + $0x88] ss:$16 sps:$4 sm:$0xff]  }
 0x15b   : > { %v891_v9 = vsel %vm619_vm2, %v879_v44, %v2901_v20  ;;  %v735_v49 = vsel %vm733_vm3, %v718_v48, %v2899_v19  ;;  %v890_v46 = vsel %vm619_vm2, %v2895_v17, %v879_v44  ;;  %v734_v54 = vsel %vm733_vm3, %v2168_v11, %v718_v48  ;;  %v2211_v44 = vld [vmem:[%s3341_s3 + $0xac] ss:$16 sps:$4 sm:$0xff]   ;;  %v2213_v48 = vld [vmem:[%s3341_s3 + $0xa8] ss:$16 sps:$4 sm:$0xff]   ;;  %v2220_v11 = vld [vmem:[%s3341_s3 + $0xe4] ss:$16 sps:$4 sm:$0xff]  }
 0x15c   : > { %1462 = vmatprep.subr.bf16.mxu0 %v891_v9  ;;  %v2169_v19 = vunpack.i.h.bf16 %v2905_v21  ;;  %v943_v21 = vsel %vm942_vm0, %v2929_v40, %v2860_v57  ;;  %v2214_v9 = vld [vmem:[%s3341_s3 + $0xc4] ss:$16 sps:$4 sm:$0xff]  }
 0x15d   : > { %1360 = vmatpush1.bf16.msra.mxu1 %v665_v14  ;;  %1463 = vmatpush1.bf16.msra.mxu0 %v890_v46  ;;  %v2217_v14 = vld [vmem:[%s3341_s3 + $0xcc] ss:$16 sps:$4 sm:$0xff]  }
 0x15e   : > { %v885_v51 = vpop.permute.xlu1 %884  ;;  %1361 = vmatprep.subr.bf16.mxu1 %v735_v49  ;;  %v724_v52 = vpop.permute.xlu0 %723  ;;  %v2216_v49 = vld [vmem:[%s3341_s3 + $0xc0] ss:$16 sps:$4 sm:$0xff]   ;;  %v2223_v46 = vld [vmem:[%s3341_s3 + $0xec] ss:$16 sps:$4 sm:$0xff]  }
 0x15f   : > { %v893_v20 = vsel %vm619_vm2, %v885_v51, %v2909_v23  ;;  %v737_v18 = vsel %vm733_vm3, %v724_v52, %v2907_v22  ;;  %v892_v17 = vsel %vm619_vm2, %v2903_v1, %v885_v51  ;;  %v944_v23 = vsel %vm942_vm0, %v2860_v57, %v2865_v59  ;;  %v2219_v51 = vld [vmem:[%s3341_s3 + $0xc8] ss:$16 sps:$4 sm:$0xff]  }
 0x160   : > { %1464 = vmatprep.subr.bf16.mxu0 %v893_v20  ;;  %v736_v58 = vsel %vm733_vm3, %v2169_v19, %v724_v52  ;;  %v946_v1 = vsel %vm942_vm0, %v2949_v56, %v2927_v39  ;;  %v948_v57 = vsel %vm942_vm0, %v2954_v27, %v2972_v0  ;;  %v2222_v20 = vld [vmem:[%s3341_s3 + $0xe0] ss:$16 sps:$4 sm:$0xff]   ;;  %v2225_v52 = vld [vmem:[%s3341_s3 + $0xe8] ss:$16 sps:$4 sm:$0xff]  }
 0x161   : > { %1362 = vmatpush1.bf16.msra.mxu1 %v734_v54  ;;  %1465 = vmatpush1.bf16.msra.mxu0 %v892_v17 }
 0x162   : > { %v730_v36 = vpop.permute.xlu1 %729  ;;  %1363 = vmatprep.subr.bf16.mxu1 %v737_v18  ;;  %1466 = vmatprep.subr.bf16.mxu0 %v944_v23  ;;  %v999_v55 = vpop.permute.xlu0 %998 }
 0x163   : > { %v739_v22 = vsel %vm733_vm3, %v730_v36, %v2939_v50  ;;  %v738_v60 = vsel %vm733_vm3, %v2911_v24, %v730_v36  ;;  %v945_v50 = vsel %vm942_vm0, %v2960_v31, %v2949_v56  ;;  %v947_v24 = vsel %vm942_vm0, %v2966_v63, %v2954_v27 }
 0x165   : > { %1364 = vmatpush1.bf16.msra.mxu1 %v736_v58  ;;  %1467 = vmatpush1.bf16.msra.mxu0 %v943_v21 }
 0x166   : > { %v1001_v29 = vpop.permute.xlu1 %1000  ;;  %1365 = vmatprep.subr.bf16.mxu1 %v739_v22  ;;  %1468 = vmatprep.subr.bf16.mxu0 %v946_v1  ;;  %v997_v59 = vpop.permute.xlu0 %996 }
 0x167   : > { %v1015_v56 = vsel %vm477_vm15, %v999_v55, %v1001_v29  ;;  %v1014_v0 = vsel %vm477_vm15, %v997_v59, %v999_v55 }
 0x169   : > { %1366 = vmatpush1.bf16.msra.mxu1 %v738_v60  ;;  %1469 = vmatpush1.bf16.msra.mxu0 %v945_v50 }
 0x16a   : > { %v1005_v53 = vpop.permute.xlu1 %1004  ;;  %1367 = vmatprep.subr.bf16.mxu1 %v2569_v13  ;;  %1470 = vmatprep.subr.bf16.mxu0 %v948_v57  ;;  %v1007_v39 = vpop.permute.xlu0 %1006 }
 0x16d   : > { %1368 = vmatpush1.bf16.msra.mxu1 %v2564_v12  ;;  %1471 = vmatpush1.bf16.msra.mxu0 %v947_v24  ;;  %v1017_v12 = vsel %vm477_vm15, %v1005_v53, %v1007_v39 }
 0x16e   : > { %v1003_v40 = vpop.permute.xlu1 %1002  ;;  %1369 = vmatprep.subr.bf16.mxu1 %v2573_v16  ;;  %1472 = vmatprep.subr.bf16.mxu0 %v1015_v56  ;;  %v802_v13 = vpop.permute.xlu0 %801 }
 0x16f   : > { %v1016_v63 = vsel %vm477_vm15, %v1003_v40, %v1005_v53 }
 0x171   : > { %1370 = vmatpush1.bf16.msra.mxu1 %v2571_v15  ;;  %1473 = vmatpush1.bf16.msra.mxu0 %v1014_v0 }
 0x172   : > { %v804_v31 = vpop.permute.xlu1 %803  ;;  %1371 = vmatprep.subr.bf16.mxu1 %v2603_v26  ;;  %1474 = vmatprep.subr.bf16.mxu0 %v1017_v12  ;;  %v800_v61 = vpop.permute.xlu0 %799  ;;  %v2178_v26 = vld [vmem:[%s3341_s3] ss:$16 sps:$4 sm:$0xff]  }
 0x173   : > { %v818_v16 = vsel %vm692_vm10, %v802_v13, %v804_v31  ;;  %v817_v3 = vsel %vm692_vm10, %v800_v61, %v802_v13 }
 0x175   : > { %1372 = vmatpush1.bf16.msra.mxu1 %v2597_v25  ;;  %1475 = vmatpush1.bf16.msra.mxu0 %v1016_v63  ;;  %v2184_v25 = vld [vmem:[%s3341_s3 + $0x24] ss:$16 sps:$4 sm:$0xff]  }
 0x176   : > { %v1011_v27 = vpop.permute.xlu1 %1010  ;;  %1373 = vmatprep.subr.bf16.mxu1 %v818_v16  ;;  %v1013_v15 = vpop.permute.xlu0 %1012 }
 0x177   : > { %v1019_v2 = vsel %vm477_vm15, %v1011_v27, %v1013_v15 }
 0x178   : > { %1476 = vmatprep.subr.bf16.mxu0 %v1019_v2 }
 0x179   : > { %1374 = vmatpush1.bf16.msra.mxu1 %v817_v3 }
 0x17a   : > { %v1009_v28 = vpop.permute.xlu1 %1008 }
 0x17b   : > { %v1018_v30 = vsel %vm477_vm15, %v1009_v28, %v1011_v27 }
 0x17c   : > { %1376 = vmatmul.mubr.bf16.vlgmr.msra.gmra.mrb[0].mxu1 %v2178_v26  ;;  %1477 = vmatpush1.bf16.msra.mxu0 %v1018_v30 }
 0x17d   : > { %1385 = vmatprep.mubr.bf16.mxu1 %v2184_v25 }
 0x17f   : > { %1489 = vmatmul.mubr.bf16.vlgmr.msra.gmra.mrb[0].mxu0 %v2181_v62 }
 0x180   : > { %1988 = vmatprep.mubr.msk.bf16.mxu0 %vm1318_vm1, %v2187_v32 }
 0x184   : > { %1386 = vmatmul.mubr.bf16.gmra.mrb[4].mxu1 %v2186_v7 }
 0x185   : > { %1395 = vmatprep.mubr.bf16.mxu1 %v2190_v33 }
 0x187   : > { %1499 = vmatmul.mubr.bf16.gmra.mrb[4].mxu0 %v2189_v34  ;;  %v1089_v54 = vpop.permute.xlu0 %1088 }
 0x188   : > { %1989 = vmatprep.mubr.msk.bf16.mxu0 %vm1318_vm1, %v2193_v8 }
 0x18b   : > { %v1094_v19 = vpop.permute.xlu1 %1093  ;;  %v1104_v31 = vpop.permute.xlu0 %1103 }
 0x18c   : > { %1396 = vmatmul.mubr.bf16.gmra.mrb[8].mxu1 %v2192_v45 }
 0x18d   : > { %1405 = vmatprep.mubr.bf16.mxu1 %v2196_v4 }
 0x18f   : > { %1509 = vmatmul.mubr.bf16.gmra.mrb[8].mxu0 %v2195_v5  ;;  %v1099_v39 = vpop.permute.xlu1 %1098 }
 0x190   : > { %1990 = vmatprep.mubr.msk.bf16.mxu0 %vm1318_vm1, %v2199_v35  ;;  %v1114_v35 = vpop.permute.xlu0 %1113 }
 0x193   : > { %v1109_v34 = vpop.permute.xlu1 %1108 }
 0x194   : > { %1406 = vmatmul.mubr.bf16.gmra.mrb[12].mxu1 %v2198_v37 }
 0x195   : > { %1415 = vmatprep.mubr.bf16.mxu1 %v2202_v38 }
 0x197   : > { %1519 = vmatmul.mubr.bf16.gmra.mrb[12].mxu0 %v2201_v41 }
 0x198   : > { %1991 = vmatprep.mubr.msk.bf16.mxu0 %vm1318_vm1, %v2205_v42 }
 0x19c   : > { %1416 = vmatmul.mubr.bf16.gmra.mrb[16].mxu1 %v2204_v43 }
 0x19d   : > { %1425 = vmatprep.mubr.bf16.mxu1 %v2208_v10 }
 0x19f   : > { %1529 = vmatmul.mubr.bf16.gmra.mrb[16].mxu0 %v2207_v47 }
 0x1a0   : > { %1992 = vmatprep.mubr.msk.bf16.mxu0 %vm1318_vm1, %v2211_v44 }
 0x1a4   : > { %1426 = vmatmul.mubr.bf16.gmra.mrb[20].mxu1 %v2210_v6 }
 0x1a5   : > { %1435 = vmatprep.mubr.bf16.mxu1 %v2214_v9 }
 0x1a7   : > { %1539 = vmatmul.mubr.bf16.gmra.mrb[20].mxu0 %v2213_v48 }
 0x1a8   : > { %1993 = vmatprep.mubr.msk.bf16.mxu0 %vm1318_vm1, %v2217_v14 }
 0x1ac   : > { %1436 = vmatmul.mubr.bf16.gmra.mrb[24].mxu1 %v2216_v49 }
 0x1ad   : > { %1445 = vmatprep.mubr.bf16.mxu1 %v2220_v11 }
 0x1af   : > { %1549 = vmatmul.mubr.bf16.gmra.mrb[24].mxu0 %v2219_v51 }
 0x1b0   : > { %1994 = vmatprep.mubr.msk.bf16.mxu0 %vm1318_vm1, %v2223_v46 }
 0x1b4   : > { %1446 = vmatmul.mubr.bf16.gmra.mrb[28].mxu1 %v2222_v20 }
 0x1b7   : > { %1559 = vmatmul.mubr.bf16.gmra.mrb[28].mxu0 %v2225_v52  ;;  %v1119_v52 = vpop.permute.xlu1 %1118 }
 0x24f   : > { %v1377_v18 = vpop.f32.mrb[0].mxu1 }
 0x250   : > { %v1378_v36 = vadd.f32 %v1377_v18, %v1089_v54  ;;  %v1379_v17 = vpop.f32.mrb[1].mxu1 }
 0x251   : > { %v1380_v23 = vadd.f32 %v1379_v17, %v1089_v54  ;;  %v1381_v55 = vpop.f32.mrb[2].mxu1 }
 0x252   : > { %v1382_v58 = vadd.f32 %v1381_v55, %v1094_v19  ;;  %v1383_v22 = vpop.f32.mrb[3].mxu1  ;;  %v1490_v29 = vpop.f32.mrb[0].mxu0 }
 0x253   : > { %v1384_v21 = vadd.f32 %v1383_v22, %v1094_v19  ;;  %v1491_v1 = vadd.f32 %v1490_v29, %v1378_v36  ;;  %v1492_v59 = vpop.f32.mrb[1].mxu0 }
 0x254   : > { %v1493_v60 = vadd.f32 %v1492_v59, %v1380_v23  ;;  %v1494_v53 = vpop.f32.mrb[2].mxu0 }
 0x255   : > { %v1495_v50 = vadd.f32 %v1494_v53, %v1382_v58  ;;  %v1496_v57 = vpop.f32.mrb[3].mxu0  ;;  %v1995_v61 = vmul.f32 -1.442695, %v1491_v1  ;;  %v1124_v58 = vpop.permute.xlu0 %1123 }
 0x256   : > { %v1497_v40 = vadd.f32 %v1496_v57, %v1384_v21  ;;  %v1996_v15 = vmul.f32 -1.442695, %v1493_v60 }
 0x257   : > { %v1387_v24 = vpop.f32.mrb[4].mxu1  ;;  %v1997_v25 = vmul.f32 -1.442695, %v1495_v50  ;;  %2226 = vpow2.f32 %v1995_v61 }
 0x258   : > { %v1388_v56 = vadd.f32 %v1387_v24, %v1099_v39  ;;  %v1389_v13 = vpop.f32.mrb[5].mxu1  ;;  %2228 = vpow2.f32 %v1996_v15  ;;  %v1998_v33 = vmul.f32 -1.442695, %v1497_v40  ;;  %v1129_v15 = vpop.permute.xlu1 %1128 }
 0x259   : > { %v1390_v0 = vadd.f32 %v1389_v13, %v1099_v39  ;;  %v1391_v12 = vpop.f32.mrb[6].mxu1  ;;  %2230 = vpow2.f32 %v1997_v25 }
 0x25a   : > { %v1392_v16 = vadd.f32 %v1391_v12, %v1104_v31  ;;  %v1393_v27 = vpop.f32.mrb[7].mxu1  ;;  %v1500_v63 = vpop.f32.mrb[4].mxu0  ;;  %2232 = vpow2.f32 %v1998_v33 }
 0x25b   : > { %v1394_v3 = vadd.f32 %v1393_v27, %v1104_v31  ;;  %v1501_v26 = vadd.f32 %v1500_v63, %v1388_v56  ;;  %v1502_v2 = vpop.f32.mrb[5].mxu0 }
 0x25c   : > { %v1503_v28 = vadd.f32 %v1502_v2, %v1390_v0  ;;  %v1504_v30 = vpop.f32.mrb[6].mxu0 }
 0x25d   : > { %v1505_v62 = vadd.f32 %v1504_v30, %v1392_v16  ;;  %v1506_v32 = vpop.f32.mrb[7].mxu0  ;;  %v1999_v5 = vmul.f32 -1.442695, %v1501_v26 }
 0x25e   : > { %v1507_v7 = vadd.f32 %v1506_v32, %v1394_v3  ;;  %v2000_v10 = vmul.f32 -1.442695, %v1503_v28 }
 0x25f   : > { %v1397_v8 = vpop.f32.mrb[8].mxu1  ;;  %v2001_v9 = vmul.f32 -1.442695, %v1505_v62  ;;  %2234 = vpow2.f32 %v1999_v5  ;;  %v1134_v62 = vpop.permute.xlu0 %1133 }
 0x260   : > { %v1398_v45 = vadd.f32 %v1397_v8, %v1109_v34  ;;  %v1399_v4 = vpop.f32.mrb[9].mxu1  ;;  %v2002_v49 = vmul.f32 -1.442695, %v1507_v7  ;;  %2236 = vpow2.f32 %v2000_v10 }
 0x261   : > { %v1400_v37 = vadd.f32 %v1399_v4, %v1109_v34  ;;  %v1401_v38 = vpop.f32.mrb[10].mxu1  ;;  %v2227_v19 = vpop.eup %2226  ;;  %2238 = vpow2.f32 %v2001_v9 }
 0x262   : > { %v1402_v41 = vadd.f32 %v1401_v38, %v1114_v35  ;;  %v1403_v42 = vpop.f32.mrb[11].mxu1  ;;  %v1510_v43 = vpop.f32.mrb[8].mxu0  ;;  %2240 = vpow2.f32 %v2002_v49  ;;  %v1593_v50 = vadd.f32 1.0, %v2227_v19 }
 0x263   : > { %v1404_v47 = vadd.f32 %v1403_v42, %v1114_v35  ;;  %v1511_v44 = vadd.f32 %v1510_v43, %v1398_v45  ;;  %v1512_v6 = vpop.f32.mrb[9].mxu0  ;;  %v2229_v55 = vpop.eup %2228 }
 0x264   : > { %v1513_v48 = vadd.f32 %v1512_v6, %v1400_v37  ;;  %v1514_v14 = vpop.f32.mrb[10].mxu0  ;;  %v2231_v1 = vpop.eup %2230  ;;  %v1594_v24 = vadd.f32 1.0, %v2229_v55 }
 0x265   : > { %v1515_v11 = vadd.f32 %v1514_v14, %v1402_v41  ;;  %v1516_v51 = vpop.f32.mrb[11].mxu0  ;;  %v2003_v46 = vmul.f32 -1.442695, %v1511_v44  ;;  %v2233_v31 = vpop.eup %2232  ;;  %v1595_v0 = vadd.f32 1.0, %v2231_v1 }
 0x266   : > { %v1517_v20 = vadd.f32 %v1516_v51, %v1404_v47  ;;  %v2004_v54 = vmul.f32 -1.442695, %v1513_v48  ;;  %v1596_v2 = vadd.f32 1.0, %v2233_v31  ;;  %v1144_v55 = vpop.permute.xlu0 %1143 }
 0x267   : > { %v1407_v18 = vpop.f32.mrb[12].mxu1  ;;  %v2005_v36 = vmul.f32 -1.442695, %v1515_v11  ;;  %2242 = vpow2.f32 %v2003_v46 }
 0x268   : > { %v1408_v17 = vadd.f32 %v1407_v18, %v1119_v52  ;;  %v1409_v23 = vpop.f32.mrb[13].mxu1  ;;  %v2006_v22 = vmul.f32 -1.442695, %v1517_v20  ;;  %2244 = vpow2.f32 %v2004_v54 }
 0x269   : > { %v1410_v29 = vadd.f32 %v1409_v23, %v1119_v52  ;;  %v1411_v21 = vpop.f32.mrb[14].mxu1  ;;  %2246 = vpow2.f32 %v2005_v36  ;;  %v2235_v63 = vpop.eup %2234 }
 0x26a   : > { %v1412_v59 = vadd.f32 %v1411_v21, %v1124_v58  ;;  %v1413_v60 = vpop.f32.mrb[15].mxu1  ;;  %v1520_v53 = vpop.f32.mrb[12].mxu0  ;;  %2248 = vpow2.f32 %v2006_v22  ;;  %v1597_v8 = vadd.f32 1.0, %v2235_v63 }
 0x26b   : > { %v1414_v57 = vadd.f32 %v1413_v60, %v1124_v58  ;;  %v1521_v39 = vadd.f32 %v1520_v53, %v1408_v17  ;;  %v1522_v40 = vpop.f32.mrb[13].mxu0  ;;  %2250 = vrcp.f32 %v1593_v50  ;;  %v2237_v30 = vpop.eup %2236 }
 0x26c   : > { %v1523_v56 = vadd.f32 %v1522_v40, %v1410_v29  ;;  %v1524_v13 = vpop.f32.mrb[14].mxu0  ;;  %2252 = vrcp.f32 %v1594_v24  ;;  %v2239_v34 = vpop.eup %2238  ;;  %v1598_v10 = vadd.f32 1.0, %v2237_v30 }
 0x26d   : > { %v1525_v12 = vadd.f32 %v1524_v13, %v1412_v59  ;;  %v1526_v61 = vpop.f32.mrb[15].mxu0  ;;  %v2007_v16 = vmul.f32 -1.442695, %v1521_v39  ;;  %2254 = vrcp.f32 %v1595_v0  ;;  %v2241_v35 = vpop.eup %2240  ;;  %v1599_v9 = vadd.f32 1.0, %v2239_v34 }
 0x26e   : > { %v1527_v27 = vadd.f32 %v1526_v61, %v1414_v57  ;;  %v2008_v3 = vmul.f32 -1.442695, %v1523_v56  ;;  %v1600_v11 = vadd.f32 1.0, %v2241_v35  ;;  %v1139_v52 = vpop.permute.xlu1 %1138 }
 0x26f   : > { %v1417_v26 = vpop.f32.mrb[16].mxu1  ;;  %v2009_v32 = vmul.f32 -1.442695, %v1525_v12  ;;  %2256 = vpow2.f32 %v2007_v16 }
 0x270   : > { %v1418_v25 = vadd.f32 %v1417_v26, %v1129_v15  ;;  %v1419_v28 = vpop.f32.mrb[17].mxu1  ;;  %2258 = vpow2.f32 %v2008_v3  ;;  %v2010_v37 = vmul.f32 -1.442695, %v1527_v27 }
 0x271   : > { %v1420_v7 = vadd.f32 %v1419_v28, %v1129_v15  ;;  %v1421_v33 = vpop.f32.mrb[18].mxu1  ;;  %v2243_v43 = vpop.eup %2242  ;;  %2260 = vrcp.f32 %v1596_v2 }
 0x272   : > { %v1422_v45 = vadd.f32 %v1421_v33, %v1134_v62  ;;  %v1423_v4 = vpop.f32.mrb[19].mxu1  ;;  %v1530_v5 = vpop.f32.mrb[16].mxu0  ;;  %2262 = vpow2.f32 %v2009_v32  ;;  %v1641_v20 = vadd.f32 1.0, %v2243_v43 }
 0x273   : > { %v1424_v38 = vadd.f32 %v1423_v4, %v1134_v62  ;;  %v1531_v41 = vadd.f32 %v1530_v5, %v1418_v25  ;;  %v1532_v42 = vpop.f32.mrb[17].mxu0  ;;  %v2245_v6 = vpop.eup %2244  ;;  %2264 = vrcp.f32 %v1597_v8 }
 0x274   : > { %v1533_v47 = vadd.f32 %v1532_v42, %v1420_v7  ;;  %v1534_v44 = vpop.f32.mrb[18].mxu0  ;;  %v2247_v49 = vpop.eup %2246  ;;  %2266 = vpow2.f32 %v2010_v37  ;;  %v1642_v18 = vadd.f32 1.0, %v2245_v6 }
 0x275   : > { %v1535_v48 = vadd.f32 %v1534_v44, %v1422_v45  ;;  %v1536_v14 = vpop.f32.mrb[19].mxu0  ;;  %v2249_v46 = vpop.eup %2248  ;;  %2268 = vrcp.f32 %v1598_v10  ;;  %v1643_v23 = vadd.f32 1.0, %v2247_v49  ;;  %v2011_v50 = vmul.f32 -1.442695, %v1531_v41 }
 0x276   : > { %v1537_v51 = vadd.f32 %v1536_v14, %v1424_v38  ;;  %v3162_v17 = vpop.eup %2250  ;;  %2270 = vrcp.f32 %v1599_v9  ;;  %v1644_v21 = vadd.f32 1.0, %v2249_v46  ;;  %v2012_v56 = vmul.f32 -1.442695, %v1533_v47  ;;  %v1149_v2 = vpop.permute.xlu1 %1148 }
 0x277   : > { %v1427_v54 = vpop.f32.mrb[20].mxu1  ;;  %v3164_v29 = vpop.eup %2252  ;;  %2272 = vrcp.f32 %v1600_v11  ;;  %v2013_v12 = vmul.f32 -1.442695, %v1535_v48 }
 0x278   : > { %v1428_v19 = vadd.f32 %v1427_v54, %v1139_v52  ;;  %v1429_v36 = vpop.f32.mrb[21].mxu1  ;;  %v3166_v53 = vpop.eup %2254  ;;  %2274 = vrcp.f32 %v1641_v20  ;;  %v2014_v63 = vmul.f32 -1.442695, %v1537_v51 }
 0x279   : > { %v1430_v58 = vadd.f32 %v1429_v36, %v1139_v52  ;;  %v1431_v22 = vpop.f32.mrb[22].mxu1  ;;  %v2257_v24 = vpop.eup %2256  ;;  %2276 = vrcp.f32 %v1642_v18 }
 0x27a   : > { %v1432_v1 = vadd.f32 %v1431_v22, %v1144_v55  ;;  %v1433_v59 = vpop.f32.mrb[23].mxu1  ;;  %v1540_v60 = vpop.f32.mrb[20].mxu0  ;;  %2278 = vrcp.f32 %v1643_v23  ;;  %v1645_v26 = vadd.f32 1.0, %v2257_v24 }
 0x27b   : > { %v1434_v57 = vadd.f32 %v1433_v59, %v1144_v55  ;;  %v1541_v39 = vadd.f32 %v1540_v60, %v1428_v19  ;;  %v1542_v40 = vpop.f32.mrb[21].mxu0  ;;  %v2259_v0 = vpop.eup %2258  ;;  %2280 = vrcp.f32 %v1644_v21 }
 0x27c   : > { %v1543_v13 = vadd.f32 %v1542_v40, %v1430_v58  ;;  %v1544_v31 = vpop.f32.mrb[22].mxu0  ;;  %v3168_v27 = vpop.eup %2260  ;;  %2282 = vpow2.f32 %v2011_v50  ;;  %v1646_v30 = vadd.f32 1.0, %v2259_v0 }
 0x27d   : > { %v1545_v61 = vadd.f32 %v1544_v31, %v1432_v1  ;;  %v1546_v16 = vpop.f32.mrb[23].mxu0  ;;  %v2263_v3 = vpop.eup %2262  ;;  %2284 = vpow2.f32 %v2012_v56  ;;  %v2015_v41 = vmul.f32 -1.442695, %v1541_v39 }
 0x27e   : > { %v1547_v15 = vadd.f32 %v1546_v16, %v1434_v57  ;;  %v3170_v28 = vpop.eup %2264  ;;  %v1154_v33 = vpop.permute.xlu0 %1153  ;;  %2286 = vpow2.f32 %v2013_v12  ;;  %v1647_v4 = vadd.f32 1.0, %v2263_v3  ;;  %v2016_v14 = vmul.f32 -1.442695, %v1543_v13  ;;  %v1721_v16 = vld [vmem:[%s3188_s20] sm:$0xff] }
 0x27f   : > { %v1437_v25 = vpop.f32.mrb[24].mxu1  ;;  %v2267_v7 = vpop.eup %2266  ;;  %2288 = vpow2.f32 %v2014_v63  ;;  %v2017_v1 = vmul.f32 -1.442695, %v1545_v61 }
 0x280   : > { %v1438_v62 = vadd.f32 %v1437_v25, %v1149_v2  ;;  %v1439_v32 = vpop.f32.mrb[25].mxu1  ;;  %v3172_v45 = vpop.eup %2268  ;;  %2290 = vrcp.f32 %v1645_v26  ;;  %v1648_v44 = vadd.f32 1.0, %v2267_v7  ;;  %v2018_v39 = vmul.f32 -1.442695, %v1547_v15 }
 0x281   : > { %v1440_v34 = vadd.f32 %v1439_v32, %v1149_v2  ;;  %v1441_v8 = vpop.f32.mrb[26].mxu1  ;;  %v3174_v38 = vpop.eup %2270  ;;  %2292 = vrcp.f32 %v1646_v30 }
 0x282   : > { %v1442_v5 = vadd.f32 %v1441_v8, %v1154_v33  ;;  %v1443_v35 = vpop.f32.mrb[27].mxu1  ;;  %v1550_v37 = vpop.f32.mrb[24].mxu0 }
 0x283   : > { %v1444_v42 = vadd.f32 %v1443_v35, %v1154_v33  ;;  %v1551_v43 = vadd.f32 %v1550_v37, %v1438_v62  ;;  %v1552_v10 = vpop.f32.mrb[25].mxu0  ;;  %v3176_v47 = vpop.eup %2272  ;;  %v1723_v35 = vld [vmem:[%s3188_s20 + $0x10] sm:$0xff] }
 0x284   : > { %v1553_v6 = vadd.f32 %v1552_v10, %v1440_v34  ;;  %v1554_v9 = vpop.f32.mrb[26].mxu0  ;;  %v2275_v48 = vpop.eup %2274  ;;  %v1722_v34 = vld [vmem:[%s3188_s20 + $0x8] sm:$0xff] }
 0x285   : > { %2294 = vtanh.f32 %v1551_v43  ;;  %v1555_v49 = vadd.f32 %v1554_v9, %v1442_v5  ;;  %v1556_v11 = vpop.f32.mrb[27].mxu0  ;;  %v3178_v51 = vpop.eup %2276  ;;  %v1729_v62 = vmul.f32 %v2275_v48, %v1721_v16 }
 0x286   : > { %2296 = vrcp.f32 %v1647_v4  ;;  %v1557_v46 = vadd.f32 %v1556_v11, %v1444_v42  ;;  %v3180_v20 = vpop.eup %2278  ;;  %v1159_v52 = vpop.permute.xlu1 %1158  ;;  %v1724_v42 = vld [vmem:[%s3188_s20 + $0x18] sm:$0xff]  ;;  %v1730_v10 = vmul.f32 %v3178_v51, %v1722_v34 }
 0x287   : > { %2298 = vpow2.f32 %v2015_v41  ;;  %v1447_v54 = vpop.f32.mrb[28].mxu1  ;;  %v3183_v18 = vpop.eup %2280  ;;  %v1731_v48 = vmul.f32 %v3180_v20, %v1723_v35 }
 0x288   : > { %2300 = vrcp.f32 %v1648_v44  ;;  %v1448_v19 = vadd.f32 %v1447_v54, %v1159_v52  ;;  %v1449_v36 = vpop.f32.mrb[29].mxu1  ;;  %v2283_v23 = vpop.eup %2282  ;;  %v1725_v44 = vld [vmem:[%s3188_s20 + $0x20] sm:$0xff]  ;;  %v1732_v11 = vmul.f32 %v3183_v18, %v1724_v42  ;;  %v1726_v18 = vld [vmem:[%s3188_s20 + $0x28] sm:$0xff] }
 0x289   : > { %v1164_v55 = vpop.permute.xlu0 %1163  ;;  %2302 = vpow2.f32 %v2016_v14  ;;  %v1450_v58 = vadd.f32 %v1449_v36, %v1159_v52  ;;  %v1451_v22 = vpop.f32.mrb[30].mxu1  ;;  %v1689_v31 = vadd.f32 1.0, %v2283_v23 }
 0x28a   : > { %v2285_v21 = vpop.eup %2284  ;;  %2304 = vtanh.f32 %v1553_v6  ;;  %v1452_v59 = vadd.f32 %v1451_v22, %v1164_v55  ;;  %v1453_v60 = vpop.f32.mrb[31].mxu1 }
 0x28b   : > { %v1560_v50 = vpop.f32.mrb[28].mxu0  ;;  %v2287_v57 = vpop.eup %2286  ;;  %2306 = vtanh.f32 %v1555_v49  ;;  %v1454_v40 = vadd.f32 %v1453_v60, %v1164_v55  ;;  %v1690_v63 = vadd.f32 1.0, %v2285_v21  ;;  %v1727_v55 = vld [vmem:[%s3188_s20 + $0x30] sm:$0xff] }
 0x28c   : > { %v1561_v24 = vadd.f32 %v1560_v50, %v1448_v19  ;;  %v1562_v56 = vpop.f32.mrb[29].mxu0  ;;  %v2289_v13 = vpop.eup %2288  ;;  %2308 = vtanh.f32 %v1557_v46  ;;  %v1691_v8 = vadd.f32 1.0, %v2287_v57 }
 0x28d   : > { %v1563_v0 = vadd.f32 %v1562_v56, %v1450_v58  ;;  %v1564_v12 = vpop.f32.mrb[30].mxu0  ;;  %v2291_v61 = vpop.eup %2290  ;;  %v1692_v37 = vadd.f32 1.0, %v2289_v13 }
 0x28e   : > { %2310 = vtanh.f32 %v1561_v24  ;;  %v1565_v3 = vadd.f32 %v1564_v12, %v1452_v59  ;;  %v1566_v26 = vpop.f32.mrb[31].mxu0  ;;  %v3194_v15 = vpop.eup %2292  ;;  %v1728_v59 = vld [vmem:[%s3188_s20 + $0x38] sm:$0xff]  ;;  %s2360_s20 = scalar_lea.vmem %s2359_s19, 2048 }
 0x28f   : > { %2312 = vpow2.f32 %v2017_v1  ;;  %v1567_v2 = vadd.f32 %v1566_v26, %v1454_v40  ;;  %v2295_v25 = vpop.eup %2294  ;;  %v1734_v1 = vmul.f32 %v3194_v15, %v1726_v18  ;;  %p2362_p1 = scmp.lt.s32.totalorder %s2360_s20, %s2354_s17 }
 0x290   : > { %2314 = vpow2.f32 %v2018_v39  ;;  %v3197_v30 = vpop.eup %2296  ;;  %v1737_v32 = vmul.f32 %v2295_v25, %v3162_v17 }
 0x291   : > { %2316 = vrcp.f32 %v1689_v31  ;;  %v2299_v7 = vpop.eup %2298  ;;  %v1735_v57 = vmul.f32 %v3197_v30, %v1727_v55  ;;  %p2363_p2 = por %p2362_p1, %p2361_p0 }
 0x292   : > { %2318 = vrcp.f32 %v1690_v63  ;;  %v3200_v33 = vpop.eup %2300  ;;  %v1745_v4 = vadd.f32 %v1737_v32, %v1729_v62  ;;  %v1693_v43 = vadd.f32 1.0, %v2299_v7 }
 0x293   : > { %2320 = vtanh.f32 %v1563_v0  ;;  %v2303_v5 = vpop.eup %2302  ;;  %v1736_v0 = vmul.f32 %v3200_v33, %v1728_v59  ;;  %p2364_p3 = pnand %p2363_p2, %p2357_p13 }
 0x294   : > { %2322 = vtanh.f32 %v1565_v3  ;;  %v2305_v41 = vpop.eup %2304  ;;  %1769 = vst [vmem:[%s3207_s28] sm:$0xff] %v1745_v4  ;;  %v1694_v58 = vadd.f32 1.0, %v2303_v5 }
 0x295   : > { %2324 = vtanh.f32 %v1745_v4  ;;  %v2307_v17 = vpop.eup %2306  ;;  %v1738_v6 = vmul.f32 %v2305_v41, %v3164_v29  ;;  %v1733_v29 = vmul.f32 %v2291_v61, %v1725_v44 }
 0x296   : > { %2326 = vtanh.f32 %v1567_v2  ;;  %v2309_v9 = vpop.eup %2308  ;;  %v1739_v14 = vmul.f32 %v2307_v17, %v3166_v53 }
 0x297   : > { %2328 = vrcp.f32 %v1691_v8  ;;  %v1746_v46 = vadd.f32 %v1738_v6, %v1730_v10  ;;  %v1740_v51 = vmul.f32 %v2309_v9, %v3168_v27 }
 0x298   : > { %v2311_v49 = vpop.eup %2310  ;;  %2330 = vrcp.f32 %v1692_v37  ;;  %v1747_v54 = vadd.f32 %v1739_v14, %v1731_v48 }
 0x299   : > { %v2313_v52 = vpop.eup %2312  ;;  %2332 = vrcp.f32 %v1693_v43  ;;  %v1741_v20 = vmul.f32 %v2311_v49, %v3170_v28  ;;  %1770 = vst [vmem:[%s3207_s28 + $0x8] sm:$0xff] %v1746_v46  ;;  %v1748_v53 = vadd.f32 %v1740_v51, %v1732_v11 }
 0x29a   : > { %v2315_v19 = vpop.eup %2314  ;;  %2334 = vtanh.f32 %v1746_v46  ;;  %1771 = vst [vmem:[%s3207_s28 + $0x10] sm:$0xff] %v1747_v54  ;;  %v1695_v21 = vadd.f32 1.0, %v2313_v52 }
 0x29b   : > { %v2317_v36 = vpop.eup %2316  ;;  %2336 = vtanh.f32 %v1747_v54  ;;  %v1749_v23 = vadd.f32 %v1741_v20, %v1733_v29  ;;  %1772 = vst [vmem:[%s3207_s28 + $0x18] sm:$0xff] %v1748_v53  ;;  %v1696_v24 = vadd.f32 1.0, %v2315_v19 }
 0x29c   : > { %v2319_v27 = vpop.eup %2318  ;;  %2338 = vtanh.f32 %v1748_v53 }
 0x29d   : > { %v2321_v22 = vpop.eup %2320  ;;  %2340 = vtanh.f32 %v1749_v23  ;;  %1773 = vst [vmem:[%s3207_s28 + $0x20] sm:$0xff] %v1749_v23 }
 0x29e   : > { %v2323_v28 = vpop.eup %2322  ;;  %v1742_v60 = vmul.f32 %v2321_v22, %v3172_v45  ;;  %2342 = vrcp.f32 %v1694_v58 }
 0x29f   : > { %v2325_v50 = vpop.eup %2324  ;;  %v1743_v39 = vmul.f32 %v2323_v28, %v3174_v38  ;;  %2344 = vrcp.f32 %v1695_v21 }
 0x2a0   : > { %v2327_v40 = vpop.eup %2326  ;;  %v1761_v56 = vmul.f32 %v2325_v50, %v2317_v36  ;;  %v1750_v13 = vadd.f32 %v1742_v60, %v1734_v1 }
 0x2a1   : > { %v2329_v31 = vpop.eup %2328  ;;  %v1751_v45 = vadd.f32 %v1743_v39, %v1735_v57  ;;  %v1744_v12 = vmul.f32 %v2327_v40, %v3176_v47 }
 0x2a2   : > { %v2331_v61 = vpop.eup %2330  ;;  %1777 = vst [vmem:[%s3235_s12] sm:$0xff] %v1761_v56  ;;  %2346 = vtanh.f32 %v1750_v13  ;;  %1774 = vst [vmem:[%s3207_s28 + $0x28] sm:$0xff] %v1750_v13 }
 0x2a3   : > { %v2333_v38 = vpop.eup %2332  ;;  %2348 = vtanh.f32 %v1751_v45  ;;  %1775 = vst [vmem:[%s3207_s28 + $0x30] sm:$0xff] %v1751_v45  ;;  %v1752_v16 = vadd.f32 %v1744_v12, %v1736_v0 }
 0x2a4   : > { %v2335_v47 = vpop.eup %2334  ;;  %2350 = vrcp.f32 %v1696_v24 }
 0x2a5   : > { %v2337_v63 = vpop.eup %2336  ;;  %v1762_v3 = vmul.f32 %v2335_v47, %v2319_v27  ;;  %2352 = vtanh.f32 %v1752_v16  ;;  %1776 = vst [vmem:[%s3207_s28 + $0x38] sm:$0xff] %v1752_v16 }
 0x2a6   : > { %v2339_v26 = vpop.eup %2338  ;;  %v1763_v15 = vmul.f32 %v2337_v63, %v2329_v31 }
 0x2a7   : > { %2367 = shalt.err (!%p2364_p3)
}
 0x2a8   : > { %s2368_s26 = scalar_lea.hbm %s3245_s15, 1024  ;;  %s2372_s14 = scalar_lea.hbm %s3344_s6, 2048 }
 0x2a9   : > { %p2369_p4 = scmp.ne.s32.totalorder %s3245_s15, %s2368_s26  ;;  %p2373_p9 = scmp.lt.u32.totalorder %s3245_s15, %s3344_s6 }
 0x2aa   : > { %p2374_p10 = scmp.lt.u32.totalorder %s2372_s14, %s2368_s26  ;;  %p2376_p12 = scmp.lt.u32.totalorder %s2368_s26, %s3245_s15 }
 0x2ab   : > { %p2370_p7 = pnand %p2369_p4, %p2535_p5 }
 0x2ac   : > { %p2375_p11 = por %p2374_p10, %p2373_p9 }
 0x2ad   : > { %p2371_p8 = pneg %p2370_p7 }
 0x2ae   : > { %p2377_p13 = por %p2376_p12, %p2375_p11 }
 0x2b0   : > { %p2378_p0 = pnand %p2377_p13, %p2371_p8 }
 0x2b2   : > { %2381 = shalt.err (!%p2378_p0)
}
 0x2b3   : > { %s2460_s17 = smov 256   ;;  %v2341_v2 = vpop.eup %2340  ;;  %1778 = vst [vmem:[%s3235_s12 + $0x8] sm:$0xff] %v1762_v3  ;;  %v1764_v25 = vmul.f32 %v2339_v26, %v2331_v61  ;;  %1779 = vst [vmem:[%s3235_s12 + $0x10] sm:$0xff] %v1763_v15  ;;  %s1804_s20 = sshll.u32 %s3235_s12, 4  ;;  %s3291_s20 = int_to_ptr.vmem [resolvable:$true] %s1804_s20 }
 0x2b4   : > { %2097 = dma.vmem_to_hbm [thread:$0]  (%p2535_p5), %s3247_s11, 1024, %s3245_s15, %s1791_s16, %s2460_s17, %s2460_s17, %s2457_s10   ;;  %v1765_v30 = vmul.f32 %v2341_v2, %v2333_v38  ;;  %v2343_v62 = vpop.eup %2342 }
 0x2b5   : > { %1780 = vst [vmem:[%s3235_s12 + $0x18] sm:$0xff] %v1764_v25  ;;  %v2345_v32 = vpop.eup %2344  ;;  %s3289_s16 = scalar_lea.hbm %s3343_s5, %s2030_s29  ;;  %s1786_s26 = scalar_lea.sflag [#allocation5], %s3191_s9 }
 0x2b6   : > { %1781 = vst [vmem:[%s3235_s12 + $0x20] sm:$0xff] %v1765_v30  ;;  %v2347_v7 = vpop.eup %2346  ;;  %s2382_s28 = scalar_lea.vmem %s3291_s20, 1024  ;;  %s2461_s13 = smov [#allocation4]  }
 0x2b7   : > { %v2349_v33 = vpop.eup %2348  ;;  %v1766_v34 = vmul.f32 %v2347_v7, %v2343_v62  ;;  %p2383_p1 = scmp.ne.s32.totalorder %s3291_s20, %s2382_s28  ;;  %s2386_s14 = sshll.u32 %s2461_s13, 4  ;;  %s2387_s14 = int_to_ptr.vmem [resolvable:$false] %s2386_s14 }
 0x2b8   : > { %v2351_v8 = vpop.eup %2350  ;;  %v1767_v4 = vmul.f32 %v2349_v33, %v2345_v32  ;;  %s2388_s25 = scalar_lea.vmem %s2387_s14, 2048  ;;  %p2389_p4 = scmp.lt.s32.totalorder %s3291_s20, %s2387_s14 }
 0x2b9   : > { %v2353_v5 = vpop.eup %2352  ;;  %1782 = vst [vmem:[%s3235_s12 + $0x28] sm:$0xff] %v1766_v34  ;;  %p2384_p2 = pnand %p2383_p1, %p2535_p5  ;;  %p2390_p7 = scmp.lt.s32.totalorder %s2388_s25, %s2382_s28 }
 0x2ba   : > { %1783 = vst [vmem:[%s3235_s12 + $0x30] sm:$0xff] %v1767_v4  ;;  %v1768_v35 = vmul.f32 %v2353_v5, %v2351_v8 }
 0x2bb   : > { %p2385_p3 = pneg %p2384_p2  ;;  %p2391_p8 = por %p2390_p7, %p2389_p4 }
 0x2bc   : > { %1784 = vst [vmem:[%s3235_s12 + $0x38] sm:$0xff] %v1768_v35 }
 0x2bd   : > { %p2392_p9 = pnand %p2391_p8, %p2385_p3 }
 0x2bf   : > { %2395 = shalt.err (!%p2392_p9)
}
 0x2c0   : > { %s2396_s29 = scalar_lea.hbm %s3289_s16, 1024  ;;  %s2400_s19 = scalar_lea.hbm %s3343_s5, 2048 }
 0x2c1   : > { %p2397_p10 = scmp.ne.s32.totalorder %s3289_s16, %s2396_s29  ;;  %p2401_p13 = scmp.lt.u32.totalorder %s3289_s16, %s3343_s5 }
 0x2c2   : > { %p2402_p0 = scmp.lt.u32.totalorder %s2400_s19, %s2396_s29  ;;  %p2404_p2 = scmp.lt.u32.totalorder %s2396_s29, %s3289_s16 }
 0x2c3   : > { %p2398_p11 = pnand %p2397_p10, %p2535_p5 }
 0x2c4   : > { %p2403_p1 = por %p2402_p0, %p2401_p13 }
 0x2c5   : > { %p2399_p12 = pneg %p2398_p11 }
 0x2c6   : > { %p2405_p3 = por %p2404_p2, %p2403_p1 }
 0x2c8   : > { %p2406_p4 = pnand %p2405_p3, %p2399_p12 }
 0x2ca   : > { %2409 = shalt.err (!%p2406_p4)
}
 0x2cb   : > { %2096 = dma.vmem_to_hbm [thread:$0]  (%p2535_p5), %s3291_s20, 1024, %s3289_s16, %s1786_s26, %s2460_s17, %s2460_s17, %s2457_s10  }
 0x2cc PF: > { %p2107_p7 = scmp.ge.s32.totalorder %s2448_s24, 2  ;;  %s1835_s28 = sand.u32 1, %s2436_s21  }
 0x2cd   : > { %s1836_s13 = scalar_lea.sflag [#allocation5], %s1835_s28 }
 0x2ce   : > { %p2101_p8 = pnand %p2107_p7, %p2539_p6 }
 0x2d0   : > { %2427 = dma.done.wait (!%p2101_p8), %s1836_s13, 1024  }
 0x2d1   : > { %2429 = vsyncadd (!%p2101_p8), %s1836_s13, 4294966272  ;;  %s1845_s7 = scalar_lea.sflag [#allocation7], %s1835_s28 }
 0x2d2   : > { %2431 = dma.done.wait (!%p2101_p8), %s1845_s7, 1024  }
 0x2d3   : > { %2433 = vsyncadd (!%p2101_p8), %s1845_s7, 4294966272  ;;  %p20_p5 = scmp.ge.s32.totalorder %s2522_s27, 4   ;;  %s3347_s21 = smov %s2440_s22 }
 0x2d4   : > { %s3348_s22 = smov %s2444_s23  ;;  %s3349_s23 = smov %s2533_s30 }
 0x2d5   : > { %s3350_s24 = smov %s2522_s27  ;;  %22 = sbr.rel (!%p20_p5) target bundleno = 5 (0x5), region = 98 }
 0x2dc   :  { %1850 = vsyncpa [#allocation5], 1 }
 0x2dd   :  { %1852 = vsyncpa [#allocation5 + $0x1], 1 }
 0x2de   :  { %1853 = vsyncpa [#allocation7], 1 }
 0x2df   :  { %1855 = vsyncpa [#allocation7 + $0x1], 1 }

</bundles_post_ra>
